<compile_context>
chip_gen: v7x
topology: tpu7x:2x2x1
jax: 0.10.0
libtpu: 0.0.40
codegen_flags: <defaults>
</compile_context>

<pallas_src>
import jax
import jax.numpy as jnp
from jax.experimental import pallas as pl
from jax.experimental.pallas import tpu as pltpu

INPUT_DIM = 4
H1 = 32
H2 = 64
H3 = 512
OUT_DIM = 1
HCAT = 128        # carried state width: [h1 (32) | h2 (64) | zero pad (32)]


# --------------------------------------------------------------------------------------
# Kernel
# --------------------------------------------------------------------------------------
def _lstm_gates(gates, c, hid):
    """gates: (Bp, 4*hid) packed [i | f | o | g] (f32); c: (Bp, hid) f32."""
    sig = jax.nn.sigmoid(gates)                 # sigmoid of the g slab is unused (same vregs)
    i = sig[:, 0 * hid:1 * hid]
    f = sig[:, 1 * hid:2 * hid]
    o = sig[:, 2 * hid:3 * hid]
    g = jnp.tanh(gates[:, 3 * hid:4 * hid])
    c_new = f * c + i * g
    h_new = o * jnp.tanh(c_new)
    return h_new, c_new


def bitcoin_kernel(xp1_ref, whh1_ref, w2_ref, b2_ref, whead_ref, bhead_ref, out_ref):
    T = xp1_ref.shape[0]
    Bp = xp1_ref.shape[1]

    whh1 = whh1_ref[...]        # (HCAT, 4*H1) bf16, rows >= H1 are zero
    w2 = w2_ref[...]            # (HCAT, 4*H2) bf16, stacked [wih2; whh2; 0]
    b2 = b2_ref[...]            # (1, 4*H2)    f32

    z1 = jnp.zeros((Bp, H1), jnp.float32)
    z2 = jnp.zeros((Bp, H2), jnp.float32)

    # Prologue: layer-1 step 0.  h1_{-1} = 0 so the recurrent term vanishes -> gates = xp1[0].
    h1_0, c1_0 = _lstm_gates(xp1_ref[0], z1, H1)
    hcat0 = jnp.concatenate([h1_0, z2, z1], axis=1).astype(jnp.bfloat16)   # [h1_0 | 0 | 0]

    # Fused, software-pipelined recurrence.  At entry of iteration s the carry holds
    # hcat = [h1_{s-1} | h2_{s-2} | 0], c1_{s-1}, c2_{s-2}.  Both dots below depend only on
    # the previous carry, so layer-1(step s) and layer-2(step s-1) co-schedule.
    def step(s, carry):
        hcat, c1, c2 = carry
        gates2 = jnp.dot(hcat, w2, preferred_element_type=jnp.float32) + b2          # L2, step s-1
        gates1 = xp1_ref[s] + jnp.dot(hcat, whh1, preferred_element_type=jnp.float32)  # L1, step s
        h1_n, c1_n = _lstm_gates(gates1, c1, H1)
        h2_n, c2_n = _lstm_gates(gates2, c2, H2)
        hcat_n = jnp.concatenate([h1_n, h2_n, z1], axis=1).astype(jnp.bfloat16)
        return hcat_n, c1_n, c2_n

    hcat, _, c2 = jax.lax.fori_loop(1, T, step, (hcat0, c1_0, z2), unroll=True)

    # Epilogue: layer-2 step T-1 (its input h1_{T-1} sits in hcat), then the folded head.
    gates2 = jnp.dot(hcat, w2, preferred_element_type=jnp.float32) + b2
    h2_last, _ = _lstm_gates(gates2, c2, H2)

    out_ref[...] = (jnp.dot(h2_last, whead_ref[...], preferred_element_type=jnp.float32)
                    + bhead_ref[...])


# --------------------------------------------------------------------------------------
# Wrapper
# --------------------------------------------------------------------------------------
def bitcoin_prediction(X, kp):
    """X: (B, T, INPUT_DIM) float32 (batch_first, like the PyTorch module)."""
    B, T, D = X.shape
    assert D == INPUT_DIM
    Bp = max(8, ((B + 7) // 8) * 8)                       # pad batch to a sublane multiple

    x = jnp.transpose(X, (1, 0, 2)).astype(jnp.float32)   # (T, B, D) time-major
    if Bp != B:
        x = jnp.pad(x, ((0, 0), (0, Bp - B), (0, 0)))

    # Layer-1 input projection (K=4 -> lane-sparse, poor MXU shape) stays in XLA, fused with
    # the transpose/pad; the kernel receives the per-step gate pre-activations directly.
    xp1 = jnp.einsum("tbd,dg->tbg", x, kp["wih1"]) + kp["b1"]          # (T, Bp, 4*H1) f32

    args = (xp1, kp["whh1x"], kp["w2x"], kp["b2"], kp["whead"], kp["bhead"])

    vmem = pl.BlockSpec(memory_space=pltpu.MemorySpace.VMEM)
    out = pl.pallas_call(
        bitcoin_kernel,
        out_shape=jax.ShapeDtypeStruct((Bp, OUT_DIM), jnp.float32),
        in_specs=[vmem] * len(args),
        out_specs=vmem,
        # Total VMEM footprint (~0.3 MiB) is far below even v7x's 32 MiB scoped default,
        # so no grid tiling / vmem_limit_bytes is needed at these shapes.
    )(*args)
    return out[:B]


# --------------------------------------------------------------------------------------
# Parameter construction (logical PyTorch-shaped params + kernel-layout packing)
# --------------------------------------------------------------------------------------
def init_params(key):
    """Deterministic synthetic parameters matching the PyTorch module's shapes
    (stored pre-transposed to (in, out); LSTM biases pre-summed b_ih + b_hh;
    gate order = PyTorch's [i, f, g, o])."""
    ks = jax.random.split(key, 12)

    def unif(k, shape, bound):
        return jax.random.uniform(k, shape, jnp.float32, -bound, bound)

    b1 = 1.0 / jnp.sqrt(H1)
    b2 = 1.0 / jnp.sqrt(H2)
    bd = 1.0 / jnp.sqrt(H2)
    bf = 1.0 / jnp.sqrt(H3)
    return {
        "wih1": unif(ks[0], (INPUT_DIM, 4 * H1), b1),
        "whh1": unif(ks[1], (H1, 4 * H1), b1),
        "b1":   unif(ks[2], (1, 4 * H1), b1) + unif(ks[3], (1, 4 * H1), b1),
        "wih2": unif(ks[4], (H1, 4 * H2), b2),
        "whh2": unif(ks[5], (H2, 4 * H2), b2),
        "b2":   unif(ks[6], (1, 4 * H2), b2) + unif(ks[7], (1, 4 * H2), b2),
        "wd":   unif(ks[8], (H2, H3), bd),
        "bd":   unif(ks[9], (1, H3), bd),
        "wf":   unif(ks[10], (H3, OUT_DIM), bf),
        "bf":   unif(ks[11], (1, OUT_DIM), bf),
    }


def _pack_gate_cols(w, h):
    """(in, 4*h) in PyTorch gate order [i,f,g,o] -> (in, 4*h) in kernel order [i,f,o,g]."""
    i, f, g, o = (w[:, k * h:(k + 1) * h] for k in range(4))
    return jnp.concatenate([i, f, o, g], axis=1).astype(jnp.float32)


def prepare_params(p):
    """Host-side repack into the kernel layout:
      - gate columns reordered to [i,f,o,g] at natural width (no per-gate 128-lane padding),
      - layer-1 recurrent weight row-extended to HCAT (rows >= H1 zero),
      - layer-2 input+recurrent weights stacked to one (HCAT, 4*H2) operand,
      - recurrent-matmul weights cast to bf16 (MXU-native),
      - dense+fc folded into a single (H2, 1) head."""
    whh1x = jnp.zeros((HCAT, 4 * H1), jnp.float32)
    whh1x = whh1x.at[:H1].set(_pack_gate_cols(p["whh1"], H1))

    w2x = jnp.zeros((HCAT, 4 * H2), jnp.float32)
    w2x = w2x.at[:H1].set(_pack_gate_cols(p["wih2"], H2))               # rows hit by h1
    w2x = w2x.at[H1:H1 + H2].set(_pack_gate_cols(p["whh2"], H2))        # rows hit by h2

    return {
        "wih1":  _pack_gate_cols(p["wih1"], H1),                        # (4, 128)   f32 (wrapper)
        "b1":    _pack_gate_cols(p["b1"], H1),                          # (1, 128)   f32 (wrapper)
        "whh1x": whh1x.astype(jnp.bfloat16),                            # (128, 128) bf16
        "w2x":   w2x.astype(jnp.bfloat16),                              # (128, 256) bf16
        "b2":    _pack_gate_cols(p["b2"], H2),                          # (1, 256)   f32
        "whead": (p["wd"] @ p["wf"]).astype(jnp.float32),               # (64, 1)    f32 (folded)
        "bhead": (p["bd"] @ p["wf"] + p["bf"]).astype(jnp.float32),     # (1, 1)     f32
    }


# --------------------------------------------------------------------------------------
# Pure-JAX reference (faithful to the PyTorch module, un-folded / un-packed, all f32)
# --------------------------------------------------------------------------------------
def reference_forward(X, p):
    B, T, _ = X.shape

    def cell(x_t, h, c, wih, whh, b, hid):
        g = x_t @ wih + h @ whh + b
        i = jax.nn.sigmoid(g[:, 0 * hid:1 * hid])
        f = jax.nn.sigmoid(g[:, 1 * hid:2 * hid])
        gg = jnp.tanh(g[:, 2 * hid:3 * hid])
        o = jax.nn.sigmoid(g[:, 3 * hid:4 * hid])
        c = f * c + i * gg
        h = o * jnp.tanh(c)
        return h, c

    h1 = jnp.zeros((B, H1)); c1 = jnp.zeros((B, H1))
    h2 = jnp.zeros((B, H2)); c2 = jnp.zeros((B, H2))
    for t in range(T):
        h1, c1 = cell(X[:, t, :], h1, c1, p["wih1"], p["whh1"], p["b1"], H1)
        h2, c2 = cell(h1, h2, c2, p["wih2"], p["whh2"], p["b2"], H2)
    d = h2 @ p["wd"] + p["bd"]
    return d @ p["wf"] + p["bf"]


if __name__ == "__main__":
    key = jax.random.PRNGKey(0)
    k_x, k_p = jax.random.split(key)

    B, T = 2, 8
    X = jax.random.normal(k_x, (B, T, INPUT_DIM), jnp.float32)

    params = init_params(k_p)
    kparams = prepare_params(params)

    out = bitcoin_prediction(X, kparams)
    out = jax.block_until_ready(out)

    ref = reference_forward(X, params)
    assert out.shape == (B, OUT_DIM)
    # Tolerance covers bf16 rounding of the recurrent-matmul operands at T=8 (review item);
    # real bugs (gate order / dropped timestep / bad fold) produce errors >= 5e-2.
    assert jnp.allclose(out, ref, rtol=5e-3, atol=5e-3), (out, ref)

    print("KERNEL_OK")
</pallas_src>

<mosaic_0001>
module attributes {stable_mosaic.version = 11 : i64} {
  func.func @bitcoin_kernel(%arg0: memref<8x8x128xf32, #tpu.memory_space<vmem>>, %arg1: memref<128x128xbf16, #tpu.memory_space<vmem>>, %arg2: memref<128x256xbf16, #tpu.memory_space<vmem>>, %arg3: memref<1x256xf32, #tpu.memory_space<vmem>>, %arg4: memref<64x1xf32, #tpu.memory_space<vmem>>, %arg5: memref<1x1xf32, #tpu.memory_space<vmem>>, %arg6: memref<8x1xf32, #tpu.memory_space<vmem>>) attributes {dimension_semantics = [], scalar_prefetch = 0 : i64, scratch_operands = 0 : i64, tpu.core_type = #tpu.core_type<tc>} {
    %c0 = arith.constant 0 : index
    %c0_0 = arith.constant 0 : index
    %0 = vector.load %arg1[%c0, %c0_0] : memref<128x128xbf16, #tpu.memory_space<vmem>>, vector<128x128xbf16>
    %c0_1 = arith.constant 0 : index
    %c0_2 = arith.constant 0 : index
    %1 = vector.load %arg2[%c0_1, %c0_2] : memref<128x256xbf16, #tpu.memory_space<vmem>>, vector<128x256xbf16>
    %c0_3 = arith.constant 0 : index
    %c0_4 = arith.constant 0 : index
    %2 = vector.load %arg3[%c0_3, %c0_4] : memref<1x256xf32, #tpu.memory_space<vmem>>, vector<1x256xf32>
    %cst = arith.constant 0.000000e+00 : f32
    %3 = vector.broadcast %cst : f32 to vector<8x32xf32>
    %cst_5 = arith.constant 0.000000e+00 : f32
    %4 = vector.broadcast %cst_5 : f32 to vector<8x64xf32>
    %c0_6 = arith.constant 0 : index
    %c0_7 = arith.constant 0 : index
    %c0_8 = arith.constant 0 : index
    %5 = vector.load %arg0[%c0_6, %c0_7, %c0_8] : memref<8x8x128xf32, #tpu.memory_space<vmem>>, vector<1x8x128xf32>
    %6 = vector.shape_cast %5 : vector<1x8x128xf32> to vector<8x128xf32>
    %7 = arith.negf %6 : vector<8x128xf32>
    %8 = math.exp %7 : vector<8x128xf32>
    %cst_9 = arith.constant 1.000000e+00 : f32
    %9 = vector.broadcast %cst_9 : f32 to vector<8x128xf32>
    %10 = arith.addf %9, %8 : vector<8x128xf32>
    %11 = arith.divf %9, %10 : vector<8x128xf32>
    %12 = vector.extract_strided_slice %11 {offsets = [0, 0], sizes = [8, 32], strides = [1, 1]} : vector<8x128xf32> to vector<8x32xf32>
    %13 = vector.extract_strided_slice %11 {offsets = [0, 32], sizes = [8, 32], strides = [1, 1]} : vector<8x128xf32> to vector<8x32xf32>
    %14 = vector.extract_strided_slice %11 {offsets = [0, 64], sizes = [8, 32], strides = [1, 1]} : vector<8x128xf32> to vector<8x32xf32>
    %15 = vector.extract_strided_slice %6 {offsets = [0, 96], sizes = [8, 32], strides = [1, 1]} : vector<8x128xf32> to vector<8x32xf32>
    %16 = math.tanh %15 : vector<8x32xf32>
    %17 = arith.mulf %13, %3 : vector<8x32xf32>
    %18 = arith.mulf %12, %16 : vector<8x32xf32>
    %19 = arith.addf %17, %18 : vector<8x32xf32>
    %20 = math.tanh %19 : vector<8x32xf32>
    %21 = arith.mulf %14, %20 : vector<8x32xf32>
    %22 = tpu.concatenate %21, %4, %3 in 1 : vector<8x32xf32>, vector<8x64xf32>, vector<8x32xf32> -> vector<8x128xf32>
    %23 = arith.truncf %22 : vector<8x128xf32> to vector<8x128xbf16>
    %c1_i32 = arith.constant 1 : i32
    %cst_10 = arith.constant dense<0.000000e+00> : vector<8x256xf32>
    %24 = tpu.matmul %23, %1, %cst_10 {dimension_numbers = #tpu.dot_dimension_numbers<[1], [0], [0], [1], [0, 0, 1, 1], [], []>} : vector<8x128xbf16>, vector<128x256xbf16>, vector<8x256xf32> -> vector<8x256xf32>
    %25 = vector.broadcast %2 : vector<1x256xf32> to vector<8x256xf32>
    %26 = arith.addf %24, %25 : vector<8x256xf32>
    %27 = arith.index_cast %c1_i32 : i32 to index
    %c0_11 = arith.constant 0 : index
    %c0_12 = arith.constant 0 : index
    %28 = vector.load %arg0[%27, %c0_11, %c0_12] : memref<8x8x128xf32, #tpu.memory_space<vmem>>, vector<1x8x128xf32>
    %29 = vector.shape_cast %28 : vector<1x8x128xf32> to vector<8x128xf32>
    %cst_13 = arith.constant dense<0.000000e+00> : vector<8x128xf32>
    %30 = tpu.matmul %23, %0, %cst_13 {dimension_numbers = #tpu.dot_dimension_numbers<[1], [0], [0], [1], [0, 0, 1, 1], [], []>} : vector<8x128xbf16>, vector<128x128xbf16>, vector<8x128xf32> -> vector<8x128xf32>
    %31 = arith.addf %29, %30 : vector<8x128xf32>
    %32 = arith.negf %31 : vector<8x128xf32>
    %33 = math.exp %32 : vector<8x128xf32>
    %cst_14 = arith.constant 1.000000e+00 : f32
    %34 = vector.broadcast %cst_14 : f32 to vector<8x128xf32>
    %35 = arith.addf %34, %33 : vector<8x128xf32>
    %36 = arith.divf %34, %35 : vector<8x128xf32>
    %37 = vector.extract_strided_slice %36 {offsets = [0, 0], sizes = [8, 32], strides = [1, 1]} : vector<8x128xf32> to vector<8x32xf32>
    %38 = vector.extract_strided_slice %36 {offsets = [0, 32], sizes = [8, 32], strides = [1, 1]} : vector<8x128xf32> to vector<8x32xf32>
    %39 = vector.extract_strided_slice %36 {offsets = [0, 64], sizes = [8, 32], strides = [1, 1]} : vector<8x128xf32> to vector<8x32xf32>
    %40 = vector.extract_strided_slice %31 {offsets = [0, 96], sizes = [8, 32], strides = [1, 1]} : vector<8x128xf32> to vector<8x32xf32>
    %41 = math.tanh %40 : vector<8x32xf32>
    %42 = arith.mulf %38, %19 : vector<8x32xf32>
    %43 = arith.mulf %37, %41 : vector<8x32xf32>
    %44 = arith.addf %42, %43 : vector<8x32xf32>
    %45 = math.tanh %44 : vector<8x32xf32>
    %46 = arith.mulf %39, %45 : vector<8x32xf32>
    %47 = arith.negf %26 : vector<8x256xf32>
    %48 = math.exp %47 : vector<8x256xf32>
    %cst_15 = arith.constant 1.000000e+00 : f32
    %49 = vector.broadcast %cst_15 : f32 to vector<8x256xf32>
    %50 = arith.addf %49, %48 : vector<8x256xf32>
    %51 = arith.divf %49, %50 : vector<8x256xf32>
    %52 = vector.extract_strided_slice %51 {offsets = [0, 0], sizes = [8, 64], strides = [1, 1]} : vector<8x256xf32> to vector<8x64xf32>
    %53 = vector.extract_strided_slice %51 {offsets = [0, 64], sizes = [8, 64], strides = [1, 1]} : vector<8x256xf32> to vector<8x64xf32>
    %54 = vector.extract_strided_slice %51 {offsets = [0, 128], sizes = [8, 64], strides = [1, 1]} : vector<8x256xf32> to vector<8x64xf32>
    %55 = vector.extract_strided_slice %26 {offsets = [0, 192], sizes = [8, 64], strides = [1, 1]} : vector<8x256xf32> to vector<8x64xf32>
    %56 = math.tanh %55 : vector<8x64xf32>
    %57 = arith.mulf %53, %4 : vector<8x64xf32>
    %58 = arith.mulf %52, %56 : vector<8x64xf32>
    %59 = arith.addf %57, %58 : vector<8x64xf32>
    %60 = math.tanh %59 : vector<8x64xf32>
    %61 = arith.mulf %54, %60 : vector<8x64xf32>
    %62 = tpu.concatenate %46, %61, %3 in 1 : vector<8x32xf32>, vector<8x64xf32>, vector<8x32xf32> -> vector<8x128xf32>
    %63 = arith.truncf %62 : vector<8x128xf32> to vector<8x128xbf16>
    %c2_i32 = arith.constant 2 : i32
    %cst_16 = arith.constant dense<0.000000e+00> : vector<8x256xf32>
    %64 = tpu.matmul %63, %1, %cst_16 {dimension_numbers = #tpu.dot_dimension_numbers<[1], [0], [0], [1], [0, 0, 1, 1], [], []>} : vector<8x128xbf16>, vector<128x256xbf16>, vector<8x256xf32> -> vector<8x256xf32>
    %65 = vector.broadcast %2 : vector<1x256xf32> to vector<8x256xf32>
    %66 = arith.addf %64, %65 : vector<8x256xf32>
    %67 = arith.index_cast %c2_i32 : i32 to index
    %c0_17 = arith.constant 0 : index
    %c0_18 = arith.constant 0 : index
    %68 = vector.load %arg0[%67, %c0_17, %c0_18] : memref<8x8x128xf32, #tpu.memory_space<vmem>>, vector<1x8x128xf32>
    %69 = vector.shape_cast %68 : vector<1x8x128xf32> to vector<8x128xf32>
    %cst_19 = arith.constant dense<0.000000e+00> : vector<8x128xf32>
    %70 = tpu.matmul %63, %0, %cst_19 {dimension_numbers = #tpu.dot_dimension_numbers<[1], [0], [0], [1], [0, 0, 1, 1], [], []>} : vector<8x128xbf16>, vector<128x128xbf16>, vector<8x128xf32> -> vector<8x128xf32>
    %71 = arith.addf %69, %70 : vector<8x128xf32>
    %72 = arith.negf %71 : vector<8x128xf32>
    %73 = math.exp %72 : vector<8x128xf32>
    %cst_20 = arith.constant 1.000000e+00 : f32
    %74 = vector.broadcast %cst_20 : f32 to vector<8x128xf32>
    %75 = arith.addf %74, %73 : vector<8x128xf32>
    %76 = arith.divf %74, %75 : vector<8x128xf32>
    %77 = vector.extract_strided_slice %76 {offsets = [0, 0], sizes = [8, 32], strides = [1, 1]} : vector<8x128xf32> to vector<8x32xf32>
    %78 = vector.extract_strided_slice %76 {offsets = [0, 32], sizes = [8, 32], strides = [1, 1]} : vector<8x128xf32> to vector<8x32xf32>
    %79 = vector.extract_strided_slice %76 {offsets = [0, 64], sizes = [8, 32], strides = [1, 1]} : vector<8x128xf32> to vector<8x32xf32>
    %80 = vector.extract_strided_slice %71 {offsets = [0, 96], sizes = [8, 32], strides = [1, 1]} : vector<8x128xf32> to vector<8x32xf32>
    %81 = math.tanh %80 : vector<8x32xf32>
    %82 = arith.mulf %78, %44 : vector<8x32xf32>
    %83 = arith.mulf %77, %81 : vector<8x32xf32>
    %84 = arith.addf %82, %83 : vector<8x32xf32>
    %85 = math.tanh %84 : vector<8x32xf32>
    %86 = arith.mulf %79, %85 : vector<8x32xf32>
    %87 = arith.negf %66 : vector<8x256xf32>
    %88 = math.exp %87 : vector<8x256xf32>
    %cst_21 = arith.constant 1.000000e+00 : f32
    %89 = vector.broadcast %cst_21 : f32 to vector<8x256xf32>
    %90 = arith.addf %89, %88 : vector<8x256xf32>
    %91 = arith.divf %89, %90 : vector<8x256xf32>
    %92 = vector.extract_strided_slice %91 {offsets = [0, 0], sizes = [8, 64], strides = [1, 1]} : vector<8x256xf32> to vector<8x64xf32>
    %93 = vector.extract_strided_slice %91 {offsets = [0, 64], sizes = [8, 64], strides = [1, 1]} : vector<8x256xf32> to vector<8x64xf32>
    %94 = vector.extract_strided_slice %91 {offsets = [0, 128], sizes = [8, 64], strides = [1, 1]} : vector<8x256xf32> to vector<8x64xf32>
    %95 = vector.extract_strided_slice %66 {offsets = [0, 192], sizes = [8, 64], strides = [1, 1]} : vector<8x256xf32> to vector<8x64xf32>
    %96 = math.tanh %95 : vector<8x64xf32>
    %97 = arith.mulf %93, %59 : vector<8x64xf32>
    %98 = arith.mulf %92, %96 : vector<8x64xf32>
    %99 = arith.addf %97, %98 : vector<8x64xf32>
    %100 = math.tanh %99 : vector<8x64xf32>
    %101 = arith.mulf %94, %100 : vector<8x64xf32>
    %102 = tpu.concatenate %86, %101, %3 in 1 : vector<8x32xf32>, vector<8x64xf32>, vector<8x32xf32> -> vector<8x128xf32>
    %103 = arith.truncf %102 : vector<8x128xf32> to vector<8x128xbf16>
    %c3_i32 = arith.constant 3 : i32
    %cst_22 = arith.constant dense<0.000000e+00> : vector<8x256xf32>
    %104 = tpu.matmul %103, %1, %cst_22 {dimension_numbers = #tpu.dot_dimension_numbers<[1], [0], [0], [1], [0, 0, 1, 1], [], []>} : vector<8x128xbf16>, vector<128x256xbf16>, vector<8x256xf32> -> vector<8x256xf32>
    %105 = vector.broadcast %2 : vector<1x256xf32> to vector<8x256xf32>
    %106 = arith.addf %104, %105 : vector<8x256xf32>
    %107 = arith.index_cast %c3_i32 : i32 to index
    %c0_23 = arith.constant 0 : index
    %c0_24 = arith.constant 0 : index
    %108 = vector.load %arg0[%107, %c0_23, %c0_24] : memref<8x8x128xf32, #tpu.memory_space<vmem>>, vector<1x8x128xf32>
    %109 = vector.shape_cast %108 : vector<1x8x128xf32> to vector<8x128xf32>
    %cst_25 = arith.constant dense<0.000000e+00> : vector<8x128xf32>
    %110 = tpu.matmul %103, %0, %cst_25 {dimension_numbers = #tpu.dot_dimension_numbers<[1], [0], [0], [1], [0, 0, 1, 1], [], []>} : vector<8x128xbf16>, vector<128x128xbf16>, vector<8x128xf32> -> vector<8x128xf32>
    %111 = arith.addf %109, %110 : vector<8x128xf32>
    %112 = arith.negf %111 : vector<8x128xf32>
    %113 = math.exp %112 : vector<8x128xf32>
    %cst_26 = arith.constant 1.000000e+00 : f32
    %114 = vector.broadcast %cst_26 : f32 to vector<8x128xf32>
    %115 = arith.addf %114, %113 : vector<8x128xf32>
    %116 = arith.divf %114, %115 : vector<8x128xf32>
    %117 = vector.extract_strided_slice %116 {offsets = [0, 0], sizes = [8, 32], strides = [1, 1]} : vector<8x128xf32> to vector<8x32xf32>
    %118 = vector.extract_strided_slice %116 {offsets = [0, 32], sizes = [8, 32], strides = [1, 1]} : vector<8x128xf32> to vector<8x32xf32>
    %119 = vector.extract_strided_slice %116 {offsets = [0, 64], sizes = [8, 32], strides = [1, 1]} : vector<8x128xf32> to vector<8x32xf32>
    %120 = vector.extract_strided_slice %111 {offsets = [0, 96], sizes = [8, 32], strides = [1, 1]} : vector<8x128xf32> to vector<8x32xf32>
    %121 = math.tanh %120 : vector<8x32xf32>
    %122 = arith.mulf %118, %84 : vector<8x32xf32>
    %123 = arith.mulf %117, %121 : vector<8x32xf32>
    %124 = arith.addf %122, %123 : vector<8x32xf32>
    %125 = math.tanh %124 : vector<8x32xf32>
    %126 = arith.mulf %119, %125 : vector<8x32xf32>
    %127 = arith.negf %106 : vector<8x256xf32>
    %128 = math.exp %127 : vector<8x256xf32>
    %cst_27 = arith.constant 1.000000e+00 : f32
    %129 = vector.broadcast %cst_27 : f32 to vector<8x256xf32>
    %130 = arith.addf %129, %128 : vector<8x256xf32>
    %131 = arith.divf %129, %130 : vector<8x256xf32>
    %132 = vector.extract_strided_slice %131 {offsets = [0, 0], sizes = [8, 64], strides = [1, 1]} : vector<8x256xf32> to vector<8x64xf32>
    %133 = vector.extract_strided_slice %131 {offsets = [0, 64], sizes = [8, 64], strides = [1, 1]} : vector<8x256xf32> to vector<8x64xf32>
    %134 = vector.extract_strided_slice %131 {offsets = [0, 128], sizes = [8, 64], strides = [1, 1]} : vector<8x256xf32> to vector<8x64xf32>
    %135 = vector.extract_strided_slice %106 {offsets = [0, 192], sizes = [8, 64], strides = [1, 1]} : vector<8x256xf32> to vector<8x64xf32>
    %136 = math.tanh %135 : vector<8x64xf32>
    %137 = arith.mulf %133, %99 : vector<8x64xf32>
    %138 = arith.mulf %132, %136 : vector<8x64xf32>
    %139 = arith.addf %137, %138 : vector<8x64xf32>
    %140 = math.tanh %139 : vector<8x64xf32>
    %141 = arith.mulf %134, %140 : vector<8x64xf32>
    %142 = tpu.concatenate %126, %141, %3 in 1 : vector<8x32xf32>, vector<8x64xf32>, vector<8x32xf32> -> vector<8x128xf32>
    %143 = arith.truncf %142 : vector<8x128xf32> to vector<8x128xbf16>
    %c4_i32 = arith.constant 4 : i32
    %cst_28 = arith.constant dense<0.000000e+00> : vector<8x256xf32>
    %144 = tpu.matmul %143, %1, %cst_28 {dimension_numbers = #tpu.dot_dimension_numbers<[1], [0], [0], [1], [0, 0, 1, 1], [], []>} : vector<8x128xbf16>, vector<128x256xbf16>, vector<8x256xf32> -> vector<8x256xf32>
    %145 = vector.broadcast %2 : vector<1x256xf32> to vector<8x256xf32>
    %146 = arith.addf %144, %145 : vector<8x256xf32>
    %147 = arith.index_cast %c4_i32 : i32 to index
    %c0_29 = arith.constant 0 : index
    %c0_30 = arith.constant 0 : index
    %148 = vector.load %arg0[%147, %c0_29, %c0_30] : memref<8x8x128xf32, #tpu.memory_space<vmem>>, vector<1x8x128xf32>
    %149 = vector.shape_cast %148 : vector<1x8x128xf32> to vector<8x128xf32>
    %cst_31 = arith.constant dense<0.000000e+00> : vector<8x128xf32>
    %150 = tpu.matmul %143, %0, %cst_31 {dimension_numbers = #tpu.dot_dimension_numbers<[1], [0], [0], [1], [0, 0, 1, 1], [], []>} : vector<8x128xbf16>, vector<128x128xbf16>, vector<8x128xf32> -> vector<8x128xf32>
    %151 = arith.addf %149, %150 : vector<8x128xf32>
    %152 = arith.negf %151 : vector<8x128xf32>
    %153 = math.exp %152 : vector<8x128xf32>
    %cst_32 = arith.constant 1.000000e+00 : f32
    %154 = vector.broadcast %cst_32 : f32 to vector<8x128xf32>
    %155 = arith.addf %154, %153 : vector<8x128xf32>
    %156 = arith.divf %154, %155 : vector<8x128xf32>
    %157 = vector.extract_strided_slice %156 {offsets = [0, 0], sizes = [8, 32], strides = [1, 1]} : vector<8x128xf32> to vector<8x32xf32>
    %158 = vector.extract_strided_slice %156 {offsets = [0, 32], sizes = [8, 32], strides = [1, 1]} : vector<8x128xf32> to vector<8x32xf32>
    %159 = vector.extract_strided_slice %156 {offsets = [0, 64], sizes = [8, 32], strides = [1, 1]} : vector<8x128xf32> to vector<8x32xf32>
    %160 = vector.extract_strided_slice %151 {offsets = [0, 96], sizes = [8, 32], strides = [1, 1]} : vector<8x128xf32> to vector<8x32xf32>
    %161 = math.tanh %160 : vector<8x32xf32>
    %162 = arith.mulf %158, %124 : vector<8x32xf32>
    %163 = arith.mulf %157, %161 : vector<8x32xf32>
    %164 = arith.addf %162, %163 : vector<8x32xf32>
    %165 = math.tanh %164 : vector<8x32xf32>
    %166 = arith.mulf %159, %165 : vector<8x32xf32>
    %167 = arith.negf %146 : vector<8x256xf32>
    %168 = math.exp %167 : vector<8x256xf32>
    %cst_33 = arith.constant 1.000000e+00 : f32
    %169 = vector.broadcast %cst_33 : f32 to vector<8x256xf32>
    %170 = arith.addf %169, %168 : vector<8x256xf32>
    %171 = arith.divf %169, %170 : vector<8x256xf32>
    %172 = vector.extract_strided_slice %171 {offsets = [0, 0], sizes = [8, 64], strides = [1, 1]} : vector<8x256xf32> to vector<8x64xf32>
    %173 = vector.extract_strided_slice %171 {offsets = [0, 64], sizes = [8, 64], strides = [1, 1]} : vector<8x256xf32> to vector<8x64xf32>
    %174 = vector.extract_strided_slice %171 {offsets = [0, 128], sizes = [8, 64], strides = [1, 1]} : vector<8x256xf32> to vector<8x64xf32>
    %175 = vector.extract_strided_slice %146 {offsets = [0, 192], sizes = [8, 64], strides = [1, 1]} : vector<8x256xf32> to vector<8x64xf32>
    %176 = math.tanh %175 : vector<8x64xf32>
    %177 = arith.mulf %173, %139 : vector<8x64xf32>
    %178 = arith.mulf %172, %176 : vector<8x64xf32>
    %179 = arith.addf %177, %178 : vector<8x64xf32>
    %180 = math.tanh %179 : vector<8x64xf32>
    %181 = arith.mulf %174, %180 : vector<8x64xf32>
    %182 = tpu.concatenate %166, %181, %3 in 1 : vector<8x32xf32>, vector<8x64xf32>, vector<8x32xf32> -> vector<8x128xf32>
    %183 = arith.truncf %182 : vector<8x128xf32> to vector<8x128xbf16>
    %c5_i32 = arith.constant 5 : i32
    %cst_34 = arith.constant dense<0.000000e+00> : vector<8x256xf32>
    %184 = tpu.matmul %183, %1, %cst_34 {dimension_numbers = #tpu.dot_dimension_numbers<[1], [0], [0], [1], [0, 0, 1, 1], [], []>} : vector<8x128xbf16>, vector<128x256xbf16>, vector<8x256xf32> -> vector<8x256xf32>
    %185 = vector.broadcast %2 : vector<1x256xf32> to vector<8x256xf32>
    %186 = arith.addf %184, %185 : vector<8x256xf32>
    %187 = arith.index_cast %c5_i32 : i32 to index
    %c0_35 = arith.constant 0 : index
    %c0_36 = arith.constant 0 : index
    %188 = vector.load %arg0[%187, %c0_35, %c0_36] : memref<8x8x128xf32, #tpu.memory_space<vmem>>, vector<1x8x128xf32>
    %189 = vector.shape_cast %188 : vector<1x8x128xf32> to vector<8x128xf32>
    %cst_37 = arith.constant dense<0.000000e+00> : vector<8x128xf32>
    %190 = tpu.matmul %183, %0, %cst_37 {dimension_numbers = #tpu.dot_dimension_numbers<[1], [0], [0], [1], [0, 0, 1, 1], [], []>} : vector<8x128xbf16>, vector<128x128xbf16>, vector<8x128xf32> -> vector<8x128xf32>
    %191 = arith.addf %189, %190 : vector<8x128xf32>
    %192 = arith.negf %191 : vector<8x128xf32>
    %193 = math.exp %192 : vector<8x128xf32>
    %cst_38 = arith.constant 1.000000e+00 : f32
    %194 = vector.broadcast %cst_38 : f32 to vector<8x128xf32>
    %195 = arith.addf %194, %193 : vector<8x128xf32>
    %196 = arith.divf %194, %195 : vector<8x128xf32>
    %197 = vector.extract_strided_slice %196 {offsets = [0, 0], sizes = [8, 32], strides = [1, 1]} : vector<8x128xf32> to vector<8x32xf32>
    %198 = vector.extract_strided_slice %196 {offsets = [0, 32], sizes = [8, 32], strides = [1, 1]} : vector<8x128xf32> to vector<8x32xf32>
    %199 = vector.extract_strided_slice %196 {offsets = [0, 64], sizes = [8, 32], strides = [1, 1]} : vector<8x128xf32> to vector<8x32xf32>
    %200 = vector.extract_strided_slice %191 {offsets = [0, 96], sizes = [8, 32], strides = [1, 1]} : vector<8x128xf32> to vector<8x32xf32>
    %201 = math.tanh %200 : vector<8x32xf32>
    %202 = arith.mulf %198, %164 : vector<8x32xf32>
    %203 = arith.mulf %197, %201 : vector<8x32xf32>
    %204 = arith.addf %202, %203 : vector<8x32xf32>
    %205 = math.tanh %204 : vector<8x32xf32>
    %206 = arith.mulf %199, %205 : vector<8x32xf32>
    %207 = arith.negf %186 : vector<8x256xf32>
    %208 = math.exp %207 : vector<8x256xf32>
    %cst_39 = arith.constant 1.000000e+00 : f32
    %209 = vector.broadcast %cst_39 : f32 to vector<8x256xf32>
    %210 = arith.addf %209, %208 : vector<8x256xf32>
    %211 = arith.divf %209, %210 : vector<8x256xf32>
    %212 = vector.extract_strided_slice %211 {offsets = [0, 0], sizes = [8, 64], strides = [1, 1]} : vector<8x256xf32> to vector<8x64xf32>
    %213 = vector.extract_strided_slice %211 {offsets = [0, 64], sizes = [8, 64], strides = [1, 1]} : vector<8x256xf32> to vector<8x64xf32>
    %214 = vector.extract_strided_slice %211 {offsets = [0, 128], sizes = [8, 64], strides = [1, 1]} : vector<8x256xf32> to vector<8x64xf32>
    %215 = vector.extract_strided_slice %186 {offsets = [0, 192], sizes = [8, 64], strides = [1, 1]} : vector<8x256xf32> to vector<8x64xf32>
    %216 = math.tanh %215 : vector<8x64xf32>
    %217 = arith.mulf %213, %179 : vector<8x64xf32>
    %218 = arith.mulf %212, %216 : vector<8x64xf32>
    %219 = arith.addf %217, %218 : vector<8x64xf32>
    %220 = math.tanh %219 : vector<8x64xf32>
    %221 = arith.mulf %214, %220 : vector<8x64xf32>
    %222 = tpu.concatenate %206, %221, %3 in 1 : vector<8x32xf32>, vector<8x64xf32>, vector<8x32xf32> -> vector<8x128xf32>
    %223 = arith.truncf %222 : vector<8x128xf32> to vector<8x128xbf16>
    %c6_i32 = arith.constant 6 : i32
    %cst_40 = arith.constant dense<0.000000e+00> : vector<8x256xf32>
    %224 = tpu.matmul %223, %1, %cst_40 {dimension_numbers = #tpu.dot_dimension_numbers<[1], [0], [0], [1], [0, 0, 1, 1], [], []>} : vector<8x128xbf16>, vector<128x256xbf16>, vector<8x256xf32> -> vector<8x256xf32>
    %225 = vector.broadcast %2 : vector<1x256xf32> to vector<8x256xf32>
    %226 = arith.addf %224, %225 : vector<8x256xf32>
    %227 = arith.index_cast %c6_i32 : i32 to index
    %c0_41 = arith.constant 0 : index
    %c0_42 = arith.constant 0 : index
    %228 = vector.load %arg0[%227, %c0_41, %c0_42] : memref<8x8x128xf32, #tpu.memory_space<vmem>>, vector<1x8x128xf32>
    %229 = vector.shape_cast %228 : vector<1x8x128xf32> to vector<8x128xf32>
    %cst_43 = arith.constant dense<0.000000e+00> : vector<8x128xf32>
    %230 = tpu.matmul %223, %0, %cst_43 {dimension_numbers = #tpu.dot_dimension_numbers<[1], [0], [0], [1], [0, 0, 1, 1], [], []>} : vector<8x128xbf16>, vector<128x128xbf16>, vector<8x128xf32> -> vector<8x128xf32>
    %231 = arith.addf %229, %230 : vector<8x128xf32>
    %232 = arith.negf %231 : vector<8x128xf32>
    %233 = math.exp %232 : vector<8x128xf32>
    %cst_44 = arith.constant 1.000000e+00 : f32
    %234 = vector.broadcast %cst_44 : f32 to vector<8x128xf32>
    %235 = arith.addf %234, %233 : vector<8x128xf32>
    %236 = arith.divf %234, %235 : vector<8x128xf32>
    %237 = vector.extract_strided_slice %236 {offsets = [0, 0], sizes = [8, 32], strides = [1, 1]} : vector<8x128xf32> to vector<8x32xf32>
    %238 = vector.extract_strided_slice %236 {offsets = [0, 32], sizes = [8, 32], strides = [1, 1]} : vector<8x128xf32> to vector<8x32xf32>
    %239 = vector.extract_strided_slice %236 {offsets = [0, 64], sizes = [8, 32], strides = [1, 1]} : vector<8x128xf32> to vector<8x32xf32>
    %240 = vector.extract_strided_slice %231 {offsets = [0, 96], sizes = [8, 32], strides = [1, 1]} : vector<8x128xf32> to vector<8x32xf32>
    %241 = math.tanh %240 : vector<8x32xf32>
    %242 = arith.mulf %238, %204 : vector<8x32xf32>
    %243 = arith.mulf %237, %241 : vector<8x32xf32>
    %244 = arith.addf %242, %243 : vector<8x32xf32>
    %245 = math.tanh %244 : vector<8x32xf32>
    %246 = arith.mulf %239, %245 : vector<8x32xf32>
    %247 = arith.negf %226 : vector<8x256xf32>
    %248 = math.exp %247 : vector<8x256xf32>
    %cst_45 = arith.constant 1.000000e+00 : f32
    %249 = vector.broadcast %cst_45 : f32 to vector<8x256xf32>
    %250 = arith.addf %249, %248 : vector<8x256xf32>
    %251 = arith.divf %249, %250 : vector<8x256xf32>
    %252 = vector.extract_strided_slice %251 {offsets = [0, 0], sizes = [8, 64], strides = [1, 1]} : vector<8x256xf32> to vector<8x64xf32>
    %253 = vector.extract_strided_slice %251 {offsets = [0, 64], sizes = [8, 64], strides = [1, 1]} : vector<8x256xf32> to vector<8x64xf32>
    %254 = vector.extract_strided_slice %251 {offsets = [0, 128], sizes = [8, 64], strides = [1, 1]} : vector<8x256xf32> to vector<8x64xf32>
    %255 = vector.extract_strided_slice %226 {offsets = [0, 192], sizes = [8, 64], strides = [1, 1]} : vector<8x256xf32> to vector<8x64xf32>
    %256 = math.tanh %255 : vector<8x64xf32>
    %257 = arith.mulf %253, %219 : vector<8x64xf32>
    %258 = arith.mulf %252, %256 : vector<8x64xf32>
    %259 = arith.addf %257, %258 : vector<8x64xf32>
    %260 = math.tanh %259 : vector<8x64xf32>
    %261 = arith.mulf %254, %260 : vector<8x64xf32>
    %262 = tpu.concatenate %246, %261, %3 in 1 : vector<8x32xf32>, vector<8x64xf32>, vector<8x32xf32> -> vector<8x128xf32>
    %263 = arith.truncf %262 : vector<8x128xf32> to vector<8x128xbf16>
    %c7_i32 = arith.constant 7 : i32
    %cst_46 = arith.constant dense<0.000000e+00> : vector<8x256xf32>
    %264 = tpu.matmul %263, %1, %cst_46 {dimension_numbers = #tpu.dot_dimension_numbers<[1], [0], [0], [1], [0, 0, 1, 1], [], []>} : vector<8x128xbf16>, vector<128x256xbf16>, vector<8x256xf32> -> vector<8x256xf32>
    %265 = vector.broadcast %2 : vector<1x256xf32> to vector<8x256xf32>
    %266 = arith.addf %264, %265 : vector<8x256xf32>
    %267 = arith.index_cast %c7_i32 : i32 to index
    %c0_47 = arith.constant 0 : index
    %c0_48 = arith.constant 0 : index
    %268 = vector.load %arg0[%267, %c0_47, %c0_48] : memref<8x8x128xf32, #tpu.memory_space<vmem>>, vector<1x8x128xf32>
    %269 = vector.shape_cast %268 : vector<1x8x128xf32> to vector<8x128xf32>
    %cst_49 = arith.constant dense<0.000000e+00> : vector<8x128xf32>
    %270 = tpu.matmul %263, %0, %cst_49 {dimension_numbers = #tpu.dot_dimension_numbers<[1], [0], [0], [1], [0, 0, 1, 1], [], []>} : vector<8x128xbf16>, vector<128x128xbf16>, vector<8x128xf32> -> vector<8x128xf32>
    %271 = arith.addf %269, %270 : vector<8x128xf32>
    %272 = arith.negf %271 : vector<8x128xf32>
    %273 = math.exp %272 : vector<8x128xf32>
    %cst_50 = arith.constant 1.000000e+00 : f32
    %274 = vector.broadcast %cst_50 : f32 to vector<8x128xf32>
    %275 = arith.addf %274, %273 : vector<8x128xf32>
    %276 = arith.divf %274, %275 : vector<8x128xf32>
    %277 = vector.extract_strided_slice %276 {offsets = [0, 0], sizes = [8, 32], strides = [1, 1]} : vector<8x128xf32> to vector<8x32xf32>
    %278 = vector.extract_strided_slice %276 {offsets = [0, 32], sizes = [8, 32], strides = [1, 1]} : vector<8x128xf32> to vector<8x32xf32>
    %279 = vector.extract_strided_slice %276 {offsets = [0, 64], sizes = [8, 32], strides = [1, 1]} : vector<8x128xf32> to vector<8x32xf32>
    %280 = vector.extract_strided_slice %271 {offsets = [0, 96], sizes = [8, 32], strides = [1, 1]} : vector<8x128xf32> to vector<8x32xf32>
    %281 = math.tanh %280 : vector<8x32xf32>
    %282 = arith.mulf %278, %244 : vector<8x32xf32>
    %283 = arith.mulf %277, %281 : vector<8x32xf32>
    %284 = arith.addf %282, %283 : vector<8x32xf32>
    %285 = math.tanh %284 : vector<8x32xf32>
    %286 = arith.mulf %279, %285 : vector<8x32xf32>
    %287 = arith.negf %266 : vector<8x256xf32>
    %288 = math.exp %287 : vector<8x256xf32>
    %cst_51 = arith.constant 1.000000e+00 : f32
    %289 = vector.broadcast %cst_51 : f32 to vector<8x256xf32>
    %290 = arith.addf %289, %288 : vector<8x256xf32>
    %291 = arith.divf %289, %290 : vector<8x256xf32>
    %292 = vector.extract_strided_slice %291 {offsets = [0, 0], sizes = [8, 64], strides = [1, 1]} : vector<8x256xf32> to vector<8x64xf32>
    %293 = vector.extract_strided_slice %291 {offsets = [0, 64], sizes = [8, 64], strides = [1, 1]} : vector<8x256xf32> to vector<8x64xf32>
    %294 = vector.extract_strided_slice %291 {offsets = [0, 128], sizes = [8, 64], strides = [1, 1]} : vector<8x256xf32> to vector<8x64xf32>
    %295 = vector.extract_strided_slice %266 {offsets = [0, 192], sizes = [8, 64], strides = [1, 1]} : vector<8x256xf32> to vector<8x64xf32>
    %296 = math.tanh %295 : vector<8x64xf32>
    %297 = arith.mulf %293, %259 : vector<8x64xf32>
    %298 = arith.mulf %292, %296 : vector<8x64xf32>
    %299 = arith.addf %297, %298 : vector<8x64xf32>
    %300 = math.tanh %299 : vector<8x64xf32>
    %301 = arith.mulf %294, %300 : vector<8x64xf32>
    %302 = tpu.concatenate %286, %301, %3 in 1 : vector<8x32xf32>, vector<8x64xf32>, vector<8x32xf32> -> vector<8x128xf32>
    %303 = arith.truncf %302 : vector<8x128xf32> to vector<8x128xbf16>
    %c7_i32_52 = arith.constant 7 : i32
    %cst_53 = arith.constant dense<0.000000e+00> : vector<8x256xf32>
    %304 = tpu.matmul %303, %1, %cst_53 {dimension_numbers = #tpu.dot_dimension_numbers<[1], [0], [0], [1], [0, 0, 1, 1], [], []>} : vector<8x128xbf16>, vector<128x256xbf16>, vector<8x256xf32> -> vector<8x256xf32>
    %305 = vector.broadcast %2 : vector<1x256xf32> to vector<8x256xf32>
    %306 = arith.addf %304, %305 : vector<8x256xf32>
    %307 = arith.negf %306 : vector<8x256xf32>
    %308 = math.exp %307 : vector<8x256xf32>
    %cst_54 = arith.constant 1.000000e+00 : f32
    %309 = vector.broadcast %cst_54 : f32 to vector<8x256xf32>
    %310 = arith.addf %309, %308 : vector<8x256xf32>
    %311 = arith.divf %309, %310 : vector<8x256xf32>
    %312 = vector.extract_strided_slice %311 {offsets = [0, 0], sizes = [8, 64], strides = [1, 1]} : vector<8x256xf32> to vector<8x64xf32>
    %313 = vector.extract_strided_slice %311 {offsets = [0, 64], sizes = [8, 64], strides = [1, 1]} : vector<8x256xf32> to vector<8x64xf32>
    %314 = vector.extract_strided_slice %311 {offsets = [0, 128], sizes = [8, 64], strides = [1, 1]} : vector<8x256xf32> to vector<8x64xf32>
    %315 = vector.extract_strided_slice %306 {offsets = [0, 192], sizes = [8, 64], strides = [1, 1]} : vector<8x256xf32> to vector<8x64xf32>
    %316 = math.tanh %315 : vector<8x64xf32>
    %317 = arith.mulf %313, %299 : vector<8x64xf32>
    %318 = arith.mulf %312, %316 : vector<8x64xf32>
    %319 = arith.addf %317, %318 : vector<8x64xf32>
    %320 = math.tanh %319 : vector<8x64xf32>
    %321 = arith.mulf %314, %320 : vector<8x64xf32>
    %c0_55 = arith.constant 0 : index
    %c0_56 = arith.constant 0 : index
    %322 = vector.load %arg4[%c0_55, %c0_56] : memref<64x1xf32, #tpu.memory_space<vmem>>, vector<64x1xf32>
    %cst_57 = arith.constant dense<0.000000e+00> : vector<8x1xf32>
    %323 = tpu.matmul %321, %322, %cst_57 {dimension_numbers = #tpu.dot_dimension_numbers<[1], [0], [0], [1], [0, 0, 1, 1], [], []>} : vector<8x64xf32>, vector<64x1xf32>, vector<8x1xf32> -> vector<8x1xf32>
    %c0_58 = arith.constant 0 : index
    %c0_59 = arith.constant 0 : index
    %324 = vector.load %arg5[%c0_58, %c0_59] : memref<1x1xf32, #tpu.memory_space<vmem>>, vector<1x1xf32>
    %325 = vector.broadcast %324 : vector<1x1xf32> to vector<8x1xf32>
    %326 = arith.addf %323, %325 : vector<8x1xf32>
    %c0_60 = arith.constant 0 : index
    %c0_61 = arith.constant 0 : index
    %327 = vector.load %arg6[%c0_60, %c0_61] : memref<8x1xf32, #tpu.memory_space<vmem>>, vector<8x1xf32>
    tpu.vector_store %arg6[%c0_60, %c0_61], %326 {strides = array<i32>} : memref<8x1xf32, #tpu.memory_space<vmem>>, vector<8x1xf32>,
    return
  }
}

</mosaic_0001>

<bundles_post_ra>
// kernel: tpu_custom_call.1
= control target key start
LH: loop header
LB: loop body
LE: loop exit
PB: predicated region body
PF: predicated region fallthrough
CT: control target
= control target key end

     0   :  { %s2742_s0 = inlined_call_operand.vmem [shape: f32[8,8,128], index: 0, kind: input, shape index: {}]   ;;  %s2743_s1 = inlined_call_operand.hbm [shape: bf16[128,128], index: 1, kind: input, shape index: {}]   ;;  %s2744_s2 = inlined_call_operand.hbm [shape: bf16[128,256], index: 2, kind: input, shape index: {}]   ;;  %s2745_s3 = inlined_call_operand.vmem [shape: f32[1,256], index: 3, kind: input, shape index: {}]   ;;  %s2746_s4 = inlined_call_operand.vmem [shape: f32[64,1], index: 4, kind: input, shape index: {}]   ;;  %s2747_s5 = inlined_call_operand.<no memory space> [shape: f32[1,1], index: 5, kind: input, shape index: {}]   ;;  %s2748_s6 = inlined_call_operand.vmem [shape: f32[8,1], index: 6, kind: output, shape index: {}]  }
   0x1   :  { %v11_v0 = vstv %s2747_s5 }
   0x2   :  { %12 = vst [vmem:[#allocation2] sm:$0x1] %v11_v0 }
   0x3   :  { %13 = vsyncpa [#allocation4], 0 }
   0x4   :  { %14 = vsyncpa [#allocation6], 0  ;;  %s2091_s23 = smov [#allocation3]   ;;  %s2043_s27 = scalar_lea.hbm %s2743_s1, 1024 }
   0x5   :  { %s22_s24 = sshll.u32 %s2091_s23, 4  ;;  %p2044_p0 = scmp.ne.s32.totalorder %s2743_s1, %s2043_s27  ;;  %s23_s24 = int_to_ptr.vmem [resolvable:$true] %s22_s24 }
   0x6   :  { %p2047_p1 = scmp.lt.u32.totalorder %s2043_s27, %s2743_s1 }
   0x8   :  { %p2049_p2 = pnand %p2047_p1, %p2044_p0 }
   0xa   :  { %2052 = shalt.err (!%p2049_p2)
}
   0xb   :  { %s2053_s5 = scalar_lea.vmem %s23_s24, 1024  ;;  %p2058_p4 = scmp.lt.s32.totalorder %s23_s24, %s23_s24 }
   0xc   :  { %p2054_p3 = scmp.ne.s32.totalorder %s23_s24, %s2053_s5  ;;  %p2059_p5 = scmp.lt.s32.totalorder %s2053_s5, %s2053_s5 }
   0xe   :  { %p2060_p6 = por %p2059_p5, %p2058_p4 }
  0x10   :  { %p2061_p7 = pnand %p2060_p6, %p2054_p3 }
  0x12   :  { %2064 = shalt.err (!%p2061_p7)
}
  0x13   :  { %s2092_s8 = smov 64   ;;  %s2093_s9 = smov 4  }
  0x14   :  { %28 = dma.hbm_to_vmem [thread:$0]  %s2743_s1, 1024, %s23_s24, [#allocation4], %s2092_s8, %s2092_s8, %s2093_s9  }
  0x15   :  { %s2094_s12 = smov [#allocation5]   ;;  %s2065_s16 = scalar_lea.hbm %s2744_s2, 2048 }
  0x16   :  { %s34_s13 = sshll.u32 %s2094_s12, 4  ;;  %p2066_p8 = scmp.ne.s32.totalorder %s2744_s2, %s2065_s16  ;;  %s35_s13 = int_to_ptr.vmem [resolvable:$true] %s34_s13 }
  0x17   :  { %p2069_p9 = scmp.lt.u32.totalorder %s2065_s16, %s2744_s2 }
  0x19   :  { %p2071_p10 = pnand %p2069_p9, %p2066_p8 }
  0x1b   :  { %2074 = shalt.err (!%p2071_p10)
}
  0x1c   :  { %s2075_s21 = scalar_lea.vmem %s35_s13, 2048  ;;  %p2080_p12 = scmp.lt.s32.totalorder %s35_s13, %s35_s13 }
  0x1d   :  { %p2076_p11 = scmp.ne.s32.totalorder %s35_s13, %s2075_s21  ;;  %p2081_p13 = scmp.lt.s32.totalorder %s2075_s21, %s2075_s21 }
  0x1f   :  { %p2082_p0 = por %p2081_p13, %p2080_p12 }
  0x21   :  { %p2083_p1 = pnand %p2082_p0, %p2076_p11 }
  0x23   :  { %2086 = shalt.err (!%p2083_p1)
}
  0x24   :  { %s2095_s1 = smov 128   ;;  %s2096_s22 = smov 8  }
  0x25   :  { %40 = dma.hbm_to_vmem [thread:$0]  %s2744_s2, 2048, %s35_s13, [#allocation6], %s2095_s1, %s2095_s1, %s2096_s22  }
  0x26   :  { %2087 = dma.done.wait [#allocation4], 1024  }
  0x27   :  { %2088 = vsyncadd [#allocation4], 4294966272 }
  0x28   :  { %2089 = dma.done.wait [#allocation6], 2048  }
  0x29   :  { %2090 = vsyncadd [#allocation6], 4294965248  ;;  %v87_v1 = vld [vmem:[%s2742_s0] sm:$0xff]  ;;  %s2097_s27 = smov 32   ;;  %v2098_v15 = vmov 0.0   ;;  %v2189_v17 = vld [vmem:[#allocation3 + $0x8] sm:$0xff]   ;;  %v122_v45 = vlaneseq }
  0x2a   :  { %1859 = vtanh.f32 %v87_v1  ;;  %v1471_v3 = vmul.f32 -1.442695, %v87_v1  ;;  %v2178_v12 = vld [vmem:[#allocation5 + $0x4] ss:$8 sps:$4 sm:$0xff]   ;;  %v2180_v13 = vld [vmem:[#allocation5] ss:$8 sps:$4 sm:$0xff]   ;;  %1645 = vmatprep.subr.bf16.mxu1 %v2098_v15 }
  0x2b   :  { %v2182_v14 = vld [vmem:[#allocation3] sm:$0xff]   ;;  %v2185_v16 = vld [vmem:[#allocation5 + $0x14] ss:$8 sps:$4 sm:$0xff]   ;;  %212 = vmatprep.subr.bf16.mxu0 %v2178_v12  ;;  %v2193_v18 = vld [vmem:[#allocation5 + $0x10] ss:$8 sps:$4 sm:$0xff]   ;;  %v2099_v38 = vmov 0  }
  0x2c   :  { %1861 = vpow2.f32 %v1471_v3  ;;  %1646 = vmatpush3.bf16.msra.mxu1 %v2182_v14  ;;  %213 = vmatpush1.bf16.msra.mxu0 %v2180_v13  ;;  %v2196_v19 = vld [vmem:[#allocation5 + $0x24] ss:$8 sps:$4 sm:$0xff]   ;;  %v2199_v20 = vld [vmem:[#allocation3 + $0x10] sm:$0xff]   ;;  %v2203_v21 = vld [vmem:[#allocation5 + $0x20] ss:$8 sps:$4 sm:$0xff]   ;;  %vm2100_vm0 = vmmov 0  }
  0x2d   :  { %1647 = vmatprep.subr.bf16.mxu1 %v2098_v15  ;;  %214 = vmatprep.subr.bf16.mxu0 %v2185_v16  ;;  %v2206_v22 = vld [vmem:[#allocation5 + $0x34] ss:$8 sps:$4 sm:$0xff]   ;;  %v2213_v25 = vld [vmem:[#allocation5 + $0x30] ss:$8 sps:$4 sm:$0xff]   ;;  %v2217_v26 = vld [vmem:[#allocation5 + $0x44] ss:$8 sps:$4 sm:$0xff]  }
  0x2e   :  { %v2209_v24 = vld [vmem:[#allocation3 + $0x18] sm:$0xff]   ;;  %v2220_v27 = vld [vmem:[#allocation3 + $0x20] sm:$0xff]   ;;  %v2230_v30 = vld [vmem:[#allocation3 + $0x28] sm:$0xff]   ;;  %244 = vmatprep.mubr.bf16.mxu0 %v2099_v38  ;;  %1661 = vmatprep.mubr.msk.bf16.mxu1 %vm2100_vm0, %v2098_v15  ;;  %vm116_vm1 = vcmask 261120   ;;  %vm118_vm2 = vcmask 785408   ;;  %v123_v46 = vshrl.u32 %v122_v45, 7 }
  0x2f   :  { %v2224_v28 = vld [vmem:[#allocation5 + $0x40] ss:$8 sps:$4 sm:$0xff]   ;;  %v2227_v29 = vld [vmem:[#allocation5 + $0x54] ss:$8 sps:$4 sm:$0xff]   ;;  %v2234_v31 = vld [vmem:[#allocation5 + $0x50] ss:$8 sps:$4 sm:$0xff]  }
  0x30   :  { %1648 = vmatpush3.bf16.msra.mxu1 %v2189_v17  ;;  %215 = vmatpush1.bf16.msra.mxu0 %v2193_v18  ;;  %v2237_v32 = vld [vmem:[#allocation5 + $0x64] ss:$8 sps:$4 sm:$0xff]   ;;  %v2240_v33 = vld [vmem:[#allocation3 + $0x30] sm:$0xff]   ;;  %v2244_v34 = vld [vmem:[#allocation5 + $0x60] ss:$8 sps:$4 sm:$0xff]   ;;  %v128_v47 = vsub.s32 1, %v123_v46 }
  0x31   :  { %1649 = vmatprep.subr.bf16.mxu1 %v2098_v15  ;;  %216 = vmatprep.subr.bf16.mxu0 %v2196_v19  ;;  %v2250_v35 = vld [vmem:[#allocation5 + $0x74] ss:$8 sps:$4 sm:$0xff]   ;;  %v2252_v36 = vld [vmem:[#allocation5 + $0x70] ss:$8 sps:$4 sm:$0xff]   ;;  %vm2267_vm3 = vmpackc.low %vm118_vm2, %vm118_vm2  ;;  %v124_v63 = vsub.s32 0, %v123_v46  ;;  %vm1389_vm4 = vcmask 523264  }
  0x32   :  { %v2254_v37 = vld [vmem:[#allocation3 + $0x38] sm:$0xff]   ;;  %v1491_v49 = vld [vmem:[%s2742_s0 + $0x8] sm:$0xff]  ;;  %vm1463_vm5 = vcmask 7168  }
  0x33   :  { %v86_v48 = vld [vmem:[%s2745_s3] sm:$0x3] }
  0x34   :  { %v1860_v2 = vpop.eup %1859  ;;  %1650 = vmatpush3.bf16.msra.mxu1 %v2199_v20  ;;  %217 = vmatpush1.bf16.msra.mxu0 %v2203_v21  ;;  %v2316_v50 = vrot.slane %v86_v48, %v128_v47  ;;  %v2321_v0 = vrot.slane %v86_v48, %v124_v63 }
  0x35   :  { %97 = vrot.lane.b32.xlu0 %v1860_v2, %s2097_s27  ;;  %218 = vmatprep.subr.bf16.mxu0 %v2206_v22 }
  0x36   :  { %v1862_v4 = vpop.eup %1861  ;;  %1651 = vmatprep.subr.bf16.mxu1 %v2098_v15 }
  0x37   :  { %v91_v5 = vadd.f32 1.0, %v1862_v4 }
  0x38   :  { %1652 = vmatpush3.bf16.msra.mxu1 %v2209_v24  ;;  %219 = vmatpush1.bf16.msra.mxu0 %v2213_v25 }
  0x39   :  { %1863 = vrcp.f32 %v91_v5  ;;  %1653 = vmatprep.subr.bf16.mxu1 %v2098_v15  ;;  %220 = vmatprep.subr.bf16.mxu0 %v2217_v26 }
  0x3c   :  { %1654 = vmatpush3.bf16.msra.mxu1 %v2220_v27  ;;  %221 = vmatpush1.bf16.msra.mxu0 %v2224_v28 }
  0x3d   :  { %1655 = vmatprep.subr.bf16.mxu1 %v2098_v15  ;;  %222 = vmatprep.subr.bf16.mxu0 %v2227_v29 }
  0x40   :  { %1656 = vmatpush3.bf16.msra.mxu1 %v2230_v30  ;;  %223 = vmatpush1.bf16.msra.mxu0 %v2234_v31 }
  0x41   :  { %1657 = vmatprep.subr.bf16.mxu1 %v2098_v15  ;;  %224 = vmatprep.subr.bf16.mxu0 %v2237_v32 }
  0x43   :  { %v2170_v6 = vpop.eup %1863 }
  0x44   :  { %v95_v9 = vmul.f32 0.0, %v2170_v6  ;;  %1658 = vmatpush3.bf16.msra.mxu1 %v2240_v33  ;;  %225 = vmatpush1.bf16.msra.mxu0 %v2244_v34 }
  0x45   :  { %1659 = vmatprep.subr.bf16.mxu1 %v2098_v15  ;;  %226 = vmatprep.subr.bf16.mxu0 %v2250_v35 }
  0x48   :  { %227 = vmatpush1.bf16.msra.mxu0 %v2252_v36  ;;  %1660 = vmatpush3.bf16.msra.mxu1 %v2254_v37 }
  0x49   :  { %409 = vmatprep.subr.bf16.mxu0 %v2178_v12  ;;  %1665 = vmatprep.subr.bf16.mxu1 %v2098_v15 }
  0xa7   :  { %v98_v7 = vpop.permute.xlu0 %97 }
  0xa8   :  { %v100_v8 = vmul.f32 %v2170_v6, %v98_v7 }
  0xaa   :  { %102 = vrot.lane.b32.xlu0 %v100_v8, %s2097_s27 }
 0x11c   :  { %v103_v10 = vpop.permute.xlu0 %102 }
 0x11d   :  { %v2175_v11 = vadd.f32 %v103_v10, %v95_v9 }
 0x11f   :  { %1865 = vtanh.f32 %v2175_v11 }
 0x129   :  { %v1866_v23 = vpop.eup %1865 }
 0x12a   :  { %108 = vrot.lane.b32.xlu1 %v1866_v23, %s2097_s27 }
 0x19c   :  { %v109_v39 = vpop.permute.xlu1 %108 }
 0x19d   :  { %v111_v40 = vmul.f32 %v2170_v6, %v109_v39 }
 0x19f   :  { %113 = vrot.lane.b32.xlu1 %v111_v40, %s2092_s8 }
 0x211   :  { %v114_v41 = vpop.permute.xlu1 %113 }
 0x212   :  { %v117_v42 = vsel %vm116_vm1, %v114_v41, 0.0 }
 0x213   :  { %v1489_v44 = vpack.c.bf16 %v117_v42, %v117_v42 }
 0x215   :  { %1490 = vmatmul.mubr.msk.bf16.vlgmr.msra.gmra.mrb[0].mxu0 %vm2267_vm3, %v1489_v44  ;;  %1662 = vmatmul.mubr.msk.bf16.vlgmr.msra.gmra.mrb[0].mxu1 %vm2267_vm3, %v1489_v44 }
 0x216   :  { %410 = vmatpush1.bf16.msra.mxu0 %v2180_v13  ;;  %1666 = vmatpush3.bf16.msra.mxu1 %v2182_v14 }
 0x217   :  { %411 = vmatprep.subr.bf16.mxu0 %v2185_v16  ;;  %1667 = vmatprep.subr.bf16.mxu1 %v2098_v15 }
 0x218   :  { %441 = vmatprep.mubr.bf16.mxu0 %v2099_v38  ;;  %1681 = vmatprep.mubr.msk.bf16.mxu1 %vm2100_vm0, %v2098_v15 }
 0x21a   :  { %412 = vmatpush1.bf16.msra.mxu0 %v2193_v18  ;;  %1668 = vmatpush3.bf16.msra.mxu1 %v2189_v17 }
 0x21b   :  { %413 = vmatprep.subr.bf16.mxu0 %v2196_v19  ;;  %1669 = vmatprep.subr.bf16.mxu1 %v2098_v15 }
 0x21e   :  { %414 = vmatpush1.bf16.msra.mxu0 %v2203_v21  ;;  %1670 = vmatpush3.bf16.msra.mxu1 %v2199_v20 }
 0x21f   :  { %415 = vmatprep.subr.bf16.mxu0 %v2206_v22  ;;  %1671 = vmatprep.subr.bf16.mxu1 %v2098_v15 }
 0x222   :  { %416 = vmatpush1.bf16.msra.mxu0 %v2213_v25  ;;  %1672 = vmatpush3.bf16.msra.mxu1 %v2209_v24 }
 0x223   :  { %417 = vmatprep.subr.bf16.mxu0 %v2217_v26  ;;  %1673 = vmatprep.subr.bf16.mxu1 %v2098_v15 }
 0x226   :  { %418 = vmatpush1.bf16.msra.mxu0 %v2224_v28  ;;  %1674 = vmatpush3.bf16.msra.mxu1 %v2220_v27 }
 0x227   :  { %419 = vmatprep.subr.bf16.mxu0 %v2227_v29  ;;  %1675 = vmatprep.subr.bf16.mxu1 %v2098_v15 }
 0x22a   :  { %420 = vmatpush1.bf16.msra.mxu0 %v2234_v31  ;;  %1676 = vmatpush3.bf16.msra.mxu1 %v2230_v30 }
 0x22b   :  { %421 = vmatprep.subr.bf16.mxu0 %v2237_v32  ;;  %1677 = vmatprep.subr.bf16.mxu1 %v2098_v15 }
 0x22e   :  { %422 = vmatpush1.bf16.msra.mxu0 %v2244_v34  ;;  %1678 = vmatpush3.bf16.msra.mxu1 %v2240_v33 }
 0x22f   :  { %423 = vmatprep.subr.bf16.mxu0 %v2250_v35  ;;  %1679 = vmatprep.subr.bf16.mxu1 %v2098_v15 }
 0x232   :  { %424 = vmatpush1.bf16.msra.mxu0 %v2252_v36  ;;  %1680 = vmatpush3.bf16.msra.mxu1 %v2254_v37 }
 0x233   :  { %558 = vmatprep.subr.bf16.mxu0 %v2178_v12  ;;  %1685 = vmatprep.subr.bf16.mxu1 %v2098_v15 }
 0x2e8   :  { %v246_v51 = vpop.f32.mrb[0].mxu0  ;;  %v337_v52 = vpop.f32.mrb[0].mxu1 }
 0x2e9   :  { %v343_v53 = vadd.f32 %v1491_v49, %v337_v52  ;;  %v248_v54 = vpop.f32.mrb[1].mxu0  ;;  %v1663_v55 = vpop.f32.mrb[1].mxu1  ;;  %v247_v1 = vadd.f32 %v246_v51, %v2321_v0 }
 0x2ea   :  { %v249_v56 = vadd.f32 %v248_v54, %v2316_v50  ;;  %v250_v57 = vpop.f32.mrb[2].mxu0  ;;  %v340_v58 = vpop.f32.mrb[2].mxu1 }
 0x2eb   :  { %1867 = vtanh.f32 %v343_v53  ;;  %v251_v59 = vpop.f32.mrb[3].mxu0  ;;  %v1664_v60 = vpop.f32.mrb[3].mxu1  ;;  %v1503_v2 = vmul.f32 -1.442695, %v343_v53  ;;  %v1504_v3 = vmul.f32 -1.442695, %v247_v1 }
 0x2ec   :  { %1869 = vtanh.f32 %v249_v56  ;;  %v1505_v51 = vmul.f32 -1.442695, %v249_v56  ;;  %v1509_v56 = vld [vmem:[%s2742_s0 + $0x10] sm:$0xff] }
 0x2ed   :  { %1871 = vpow2.f32 %v1503_v2 }
 0x2ee   :  { %1873 = vpow2.f32 %v1504_v3 }
 0x2f5   :  { %v1868_v61 = vpop.eup %1867 }
 0x2f6   :  { %v1870_v62 = vpop.eup %1869  ;;  %353 = vrot.lane.b32.xlu0 %v1868_v61, %s2097_s27 }
 0x2f7   :  { %383 = vrot.lane.b32.xlu1 %v1870_v62, %s2092_s8  ;;  %v1872_v4 = vpop.eup %1871 }
 0x2f8   :  { %v1874_v5 = vpop.eup %1873  ;;  %v347_v6 = vadd.f32 1.0, %v1872_v4 }
 0x2f9   :  { %v374_v7 = vadd.f32 1.0, %v1874_v5 }
 0x2fa   :  { %1875 = vrcp.f32 %v347_v6 }
 0x2fb   :  { %1877 = vrcp.f32 %v374_v7 }
 0x304   :  { %v1876_v8 = vpop.eup %1875 }
 0x305   :  { %v1878_v10 = vpop.eup %1877  ;;  %v351_v41 = vmul.f32 %v1876_v8, %v2175_v11 }
 0x306   :  { %v381_v44 = vmul.f32 0.0, %v1878_v10 }
 0x368   :  { %v354_v9 = vpop.permute.xlu0 %353 }
 0x369   :  { %v356_v23 = vmul.f32 %v1876_v8, %v354_v9  ;;  %v384_v39 = vpop.permute.xlu1 %383 }
 0x36a   :  { %v386_v40 = vmul.f32 %v1878_v10, %v384_v39 }
 0x36b   :  { %358 = vrot.lane.b32.xlu0 %v356_v23, %s2097_s27 }
 0x36c   :  { %388 = vrot.lane.b32.xlu1 %v386_v40, %s2092_s8 }
 0x3dd   :  { %v359_v42 = vpop.permute.xlu0 %358 }
 0x3de   :  { %v2327_v45 = vadd.f32 %v359_v42, %v351_v41  ;;  %v389_v46 = vpop.permute.xlu1 %388 }
 0x3df   :  { %v2329_v47 = vadd.f32 %v389_v46, %v381_v44 }
 0x3e0   :  { %1879 = vtanh.f32 %v2327_v45 }
 0x3e1   :  { %1881 = vtanh.f32 %v2329_v47 }
 0x3e2   :  { %1883 = vpow2.f32 %v1505_v51 }
 0x3ea   :  { %v1880_v48 = vpop.eup %1879 }
 0x3eb   :  { %v1882_v49 = vpop.eup %1881  ;;  %364 = vrot.lane.b32.xlu0 %v1880_v48, %s2097_s27 }
 0x3ec   :  { %394 = vrot.lane.b32.xlu1 %v1882_v49, %s2092_s8  ;;  %v1884_v11 = vpop.eup %1883 }
 0x3ed   :  { %v375_v52 = vadd.f32 1.0, %v1884_v11 }
 0x3ef   :  { %1885 = vrcp.f32 %v375_v52 }
 0x3f9   :  { %v1886_v54 = vpop.eup %1885 }
 0x45d   :  { %v365_v53 = vpop.permute.xlu0 %364 }
 0x45e   :  { %v367_v55 = vmul.f32 %v1876_v8, %v365_v53  ;;  %v395_v57 = vpop.permute.xlu1 %394 }
 0x45f   :  { %v397_v58 = vmul.f32 %v1886_v54, %v395_v57 }
 0x460   :  { %399 = vrot.lane.b32.xlu0 %v367_v55, %s2092_s8 }
 0x461   :  { %403 = vrot.lane.b32.xlu1 %v397_v58, %s2097_s27 }
 0x4d2   :  { %v400_v59 = vpop.permute.xlu0 %399 }
 0x4d3   :  { %v404_v60 = vpop.permute.xlu1 %403 }
 0x4d4   :  { %v406_v61 = vsel %vm116_vm1, %v400_v59, %v404_v60 }
 0x4d5   :  { %v1507_v62 = vpack.c.bf16 %v406_v61, %v406_v61 }
 0x4d7   :  { %1508 = vmatmul.mubr.msk.bf16.vlgmr.msra.gmra.mrb[4].mxu0 %vm2267_vm3, %v1507_v62  ;;  %1682 = vmatmul.mubr.msk.bf16.vlgmr.msra.gmra.mrb[4].mxu1 %vm2267_vm3, %v1507_v62 }
 0x4d8   :  { %559 = vmatpush1.bf16.msra.mxu0 %v2180_v13  ;;  %1686 = vmatpush3.bf16.msra.mxu1 %v2182_v14 }
 0x4d9   :  { %560 = vmatprep.subr.bf16.mxu0 %v2185_v16  ;;  %1687 = vmatprep.subr.bf16.mxu1 %v2098_v15 }
 0x4da   :  { %590 = vmatprep.mubr.bf16.mxu0 %v2099_v38  ;;  %1701 = vmatprep.mubr.msk.bf16.mxu1 %vm2100_vm0, %v2098_v15 }
 0x4dc   :  { %561 = vmatpush1.bf16.msra.mxu0 %v2193_v18  ;;  %1688 = vmatpush3.bf16.msra.mxu1 %v2189_v17 }
 0x4dd   :  { %562 = vmatprep.subr.bf16.mxu0 %v2196_v19  ;;  %1689 = vmatprep.subr.bf16.mxu1 %v2098_v15 }
 0x4e0   :  { %563 = vmatpush1.bf16.msra.mxu0 %v2203_v21  ;;  %1690 = vmatpush3.bf16.msra.mxu1 %v2199_v20 }
 0x4e1   :  { %564 = vmatprep.subr.bf16.mxu0 %v2206_v22  ;;  %1691 = vmatprep.subr.bf16.mxu1 %v2098_v15 }
 0x4e4   :  { %565 = vmatpush1.bf16.msra.mxu0 %v2213_v25  ;;  %1692 = vmatpush3.bf16.msra.mxu1 %v2209_v24 }
 0x4e5   :  { %566 = vmatprep.subr.bf16.mxu0 %v2217_v26  ;;  %1693 = vmatprep.subr.bf16.mxu1 %v2098_v15 }
 0x4e8   :  { %567 = vmatpush1.bf16.msra.mxu0 %v2224_v28  ;;  %1694 = vmatpush3.bf16.msra.mxu1 %v2220_v27 }
 0x4e9   :  { %568 = vmatprep.subr.bf16.mxu0 %v2227_v29  ;;  %1695 = vmatprep.subr.bf16.mxu1 %v2098_v15 }
 0x4ec   :  { %569 = vmatpush1.bf16.msra.mxu0 %v2234_v31  ;;  %1696 = vmatpush3.bf16.msra.mxu1 %v2230_v30 }
 0x4ed   :  { %570 = vmatprep.subr.bf16.mxu0 %v2237_v32  ;;  %1697 = vmatprep.subr.bf16.mxu1 %v2098_v15 }
 0x4f0   :  { %571 = vmatpush1.bf16.msra.mxu0 %v2244_v34  ;;  %1698 = vmatpush3.bf16.msra.mxu1 %v2240_v33 }
 0x4f1   :  { %572 = vmatprep.subr.bf16.mxu0 %v2250_v35  ;;  %1699 = vmatprep.subr.bf16.mxu1 %v2098_v15 }
 0x4f4   :  { %573 = vmatpush1.bf16.msra.mxu0 %v2252_v36  ;;  %1700 = vmatpush3.bf16.msra.mxu1 %v2254_v37 }
 0x4f5   :  { %707 = vmatprep.subr.bf16.mxu0 %v2178_v12  ;;  %1705 = vmatprep.subr.bf16.mxu1 %v2098_v15 }
 0x5aa   :  { %v443_v63 = vpop.f32.mrb[4].mxu0  ;;  %v486_v1 = vpop.f32.mrb[4].mxu1 }
 0x5ab   :  { %v492_v2 = vadd.f32 %v1509_v56, %v486_v1  ;;  %v445_v3 = vpop.f32.mrb[5].mxu0  ;;  %v1683_v4 = vpop.f32.mrb[5].mxu1  ;;  %v444_v39 = vadd.f32 %v443_v63, %v2321_v0 }
 0x5ac   :  { %v446_v5 = vadd.f32 %v445_v3, %v2316_v50  ;;  %v447_v6 = vpop.f32.mrb[6].mxu0  ;;  %v489_v7 = vpop.f32.mrb[6].mxu1 }
 0x5ad   :  { %1887 = vtanh.f32 %v492_v2  ;;  %v448_v8 = vpop.f32.mrb[7].mxu0  ;;  %v1684_v9 = vpop.f32.mrb[7].mxu1  ;;  %v1513_v40 = vmul.f32 -1.442695, %v492_v2  ;;  %v1514_v41 = vmul.f32 -1.442695, %v444_v39 }
 0x5ae   :  { %1889 = vtanh.f32 %v446_v5  ;;  %v1515_v63 = vmul.f32 -1.442695, %v446_v5  ;;  %v1519_v5 = vld [vmem:[%s2742_s0 + $0x18] sm:$0xff] }
 0x5af   :  { %1891 = vpow2.f32 %v1513_v40 }
 0x5b0   :  { %1893 = vpow2.f32 %v1514_v41 }
 0x5b7   :  { %v1888_v10 = vpop.eup %1887 }
 0x5b8   :  { %v1890_v23 = vpop.eup %1889  ;;  %502 = vrot.lane.b32.xlu0 %v1888_v10, %s2097_s27 }
 0x5b9   :  { %532 = vrot.lane.b32.xlu1 %v1890_v23, %s2092_s8  ;;  %v1892_v42 = vpop.eup %1891 }
 0x5ba   :  { %v1894_v44 = vpop.eup %1893  ;;  %v496_v46 = vadd.f32 1.0, %v1892_v42 }
 0x5bb   :  { %v523_v48 = vadd.f32 1.0, %v1894_v44 }
 0x5bc   :  { %1895 = vrcp.f32 %v496_v46 }
 0x5bd   :  { %1897 = vrcp.f32 %v523_v48 }
 0x5c6   :  { %v1896_v49 = vpop.eup %1895 }
 0x5c7   :  { %v1898_v11 = vpop.eup %1897  ;;  %v500_v55 = vmul.f32 %v1896_v49, %v2327_v45 }
 0x5c8   :  { %v530_v58 = vmul.f32 %v1898_v11, %v2329_v47 }
 0x62a   :  { %v503_v51 = vpop.permute.xlu0 %502 }
 0x62b   :  { %v505_v52 = vmul.f32 %v1896_v49, %v503_v51  ;;  %v533_v53 = vpop.permute.xlu1 %532 }
 0x62c   :  { %v535_v54 = vmul.f32 %v1898_v11, %v533_v53 }
 0x62d   :  { %507 = vrot.lane.b32.xlu0 %v505_v52, %s2097_s27 }
 0x62e   :  { %537 = vrot.lane.b32.xlu1 %v535_v54, %s2092_s8 }
 0x69f   :  { %v508_v57 = vpop.permute.xlu0 %507 }
 0x6a0   :  { %v2388_v59 = vadd.f32 %v508_v57, %v500_v55  ;;  %v538_v60 = vpop.permute.xlu1 %537 }
 0x6a1   :  { %v2390_v61 = vadd.f32 %v538_v60, %v530_v58 }
 0x6a2   :  { %1899 = vtanh.f32 %v2388_v59 }
 0x6a3   :  { %1901 = vtanh.f32 %v2390_v61 }
 0x6a4   :  { %1903 = vpow2.f32 %v1515_v63 }
 0x6ac   :  { %v1900_v62 = vpop.eup %1899 }
 0x6ad   :  { %v1902_v56 = vpop.eup %1901  ;;  %513 = vrot.lane.b32.xlu0 %v1900_v62, %s2097_s27 }
 0x6ae   :  { %543 = vrot.lane.b32.xlu1 %v1902_v56, %s2092_s8  ;;  %v1904_v45 = vpop.eup %1903 }
 0x6af   :  { %v524_v1 = vadd.f32 1.0, %v1904_v45 }
 0x6b1   :  { %1905 = vrcp.f32 %v524_v1 }
 0x6bb   :  { %v1906_v2 = vpop.eup %1905 }
 0x71f   :  { %v514_v47 = vpop.permute.xlu0 %513 }
 0x720   :  { %v516_v3 = vmul.f32 %v1896_v49, %v514_v47  ;;  %v544_v4 = vpop.permute.xlu1 %543 }
 0x721   :  { %v546_v6 = vmul.f32 %v1906_v2, %v544_v4 }
 0x722   :  { %548 = vrot.lane.b32.xlu0 %v516_v3, %s2092_s8 }
 0x723   :  { %552 = vrot.lane.b32.xlu1 %v546_v6, %s2097_s27 }
 0x794   :  { %v549_v7 = vpop.permute.xlu0 %548 }
 0x795   :  { %v553_v8 = vpop.permute.xlu1 %552 }
 0x796   :  { %v555_v9 = vsel %vm116_vm1, %v549_v7, %v553_v8 }
 0x797   :  { %v1517_v10 = vpack.c.bf16 %v555_v9, %v555_v9 }
 0x799   :  { %1518 = vmatmul.mubr.msk.bf16.vlgmr.msra.gmra.mrb[8].mxu0 %vm2267_vm3, %v1517_v10  ;;  %1702 = vmatmul.mubr.msk.bf16.vlgmr.msra.gmra.mrb[8].mxu1 %vm2267_vm3, %v1517_v10 }
 0x79a   :  { %708 = vmatpush1.bf16.msra.mxu0 %v2180_v13  ;;  %1706 = vmatpush3.bf16.msra.mxu1 %v2182_v14 }
 0x79b   :  { %709 = vmatprep.subr.bf16.mxu0 %v2185_v16  ;;  %1707 = vmatprep.subr.bf16.mxu1 %v2098_v15 }
 0x79c   :  { %739 = vmatprep.mubr.bf16.mxu0 %v2099_v38  ;;  %1721 = vmatprep.mubr.msk.bf16.mxu1 %vm2100_vm0, %v2098_v15 }
 0x79e   :  { %710 = vmatpush1.bf16.msra.mxu0 %v2193_v18  ;;  %1708 = vmatpush3.bf16.msra.mxu1 %v2189_v17 }
 0x79f   :  { %711 = vmatprep.subr.bf16.mxu0 %v2196_v19  ;;  %1709 = vmatprep.subr.bf16.mxu1 %v2098_v15 }
 0x7a2   :  { %712 = vmatpush1.bf16.msra.mxu0 %v2203_v21  ;;  %1710 = vmatpush3.bf16.msra.mxu1 %v2199_v20 }
 0x7a3   :  { %713 = vmatprep.subr.bf16.mxu0 %v2206_v22  ;;  %1711 = vmatprep.subr.bf16.mxu1 %v2098_v15 }
 0x7a6   :  { %714 = vmatpush1.bf16.msra.mxu0 %v2213_v25  ;;  %1712 = vmatpush3.bf16.msra.mxu1 %v2209_v24 }
 0x7a7   :  { %715 = vmatprep.subr.bf16.mxu0 %v2217_v26  ;;  %1713 = vmatprep.subr.bf16.mxu1 %v2098_v15 }
 0x7aa   :  { %716 = vmatpush1.bf16.msra.mxu0 %v2224_v28  ;;  %1714 = vmatpush3.bf16.msra.mxu1 %v2220_v27 }
 0x7ab   :  { %717 = vmatprep.subr.bf16.mxu0 %v2227_v29  ;;  %1715 = vmatprep.subr.bf16.mxu1 %v2098_v15 }
 0x7ae   :  { %718 = vmatpush1.bf16.msra.mxu0 %v2234_v31  ;;  %1716 = vmatpush3.bf16.msra.mxu1 %v2230_v30 }
 0x7af   :  { %719 = vmatprep.subr.bf16.mxu0 %v2237_v32  ;;  %1717 = vmatprep.subr.bf16.mxu1 %v2098_v15 }
 0x7b2   :  { %720 = vmatpush1.bf16.msra.mxu0 %v2244_v34  ;;  %1718 = vmatpush3.bf16.msra.mxu1 %v2240_v33 }
 0x7b3   :  { %721 = vmatprep.subr.bf16.mxu0 %v2250_v35  ;;  %1719 = vmatprep.subr.bf16.mxu1 %v2098_v15 }
 0x7b6   :  { %722 = vmatpush1.bf16.msra.mxu0 %v2252_v36  ;;  %1720 = vmatpush3.bf16.msra.mxu1 %v2254_v37 }
 0x7b7   :  { %856 = vmatprep.subr.bf16.mxu0 %v2178_v12  ;;  %1725 = vmatprep.subr.bf16.mxu1 %v2098_v15 }
 0x86c   :  { %v592_v23 = vpop.f32.mrb[8].mxu0  ;;  %v635_v39 = vpop.f32.mrb[8].mxu1 }
 0x86d   :  { %v641_v40 = vadd.f32 %v1519_v5, %v635_v39  ;;  %v594_v41 = vpop.f32.mrb[9].mxu0  ;;  %v1703_v42 = vpop.f32.mrb[9].mxu1  ;;  %v593_v53 = vadd.f32 %v592_v23, %v2321_v0 }
 0x86e   :  { %v595_v44 = vadd.f32 %v594_v41, %v2316_v50  ;;  %v596_v46 = vpop.f32.mrb[10].mxu0  ;;  %v638_v48 = vpop.f32.mrb[10].mxu1 }
 0x86f   :  { %1907 = vtanh.f32 %v641_v40  ;;  %v597_v49 = vpop.f32.mrb[11].mxu0  ;;  %v1704_v51 = vpop.f32.mrb[11].mxu1  ;;  %v1523_v54 = vmul.f32 -1.442695, %v641_v40  ;;  %v1524_v55 = vmul.f32 -1.442695, %v593_v53 }
 0x870   :  { %1909 = vtanh.f32 %v595_v44  ;;  %v1525_v23 = vmul.f32 -1.442695, %v595_v44  ;;  %v1529_v44 = vld [vmem:[%s2742_s0 + $0x20] sm:$0xff] }
 0x871   :  { %1911 = vpow2.f32 %v1523_v54 }
 0x872   :  { %1913 = vpow2.f32 %v1524_v55 }
 0x879   :  { %v1908_v11 = vpop.eup %1907 }
 0x87a   :  { %v1910_v52 = vpop.eup %1909  ;;  %651 = vrot.lane.b32.xlu0 %v1908_v11, %s2097_s27 }
 0x87b   :  { %681 = vrot.lane.b32.xlu1 %v1910_v52, %s2092_s8  ;;  %v1912_v57 = vpop.eup %1911 }
 0x87c   :  { %v1914_v58 = vpop.eup %1913  ;;  %v645_v60 = vadd.f32 1.0, %v1912_v57 }
 0x87d   :  { %v672_v62 = vadd.f32 1.0, %v1914_v58 }
 0x87e   :  { %1915 = vrcp.f32 %v645_v60 }
 0x87f   :  { %1917 = vrcp.f32 %v672_v62 }
 0x888   :  { %v1916_v56 = vpop.eup %1915 }
 0x889   :  { %v1918_v45 = vpop.eup %1917  ;;  %v649_v3 = vmul.f32 %v1916_v56, %v2388_v59 }
 0x88a   :  { %v679_v6 = vmul.f32 %v1918_v45, %v2390_v61 }
 0x8ec   :  { %v652_v63 = vpop.permute.xlu0 %651 }
 0x8ed   :  { %v654_v1 = vmul.f32 %v1916_v56, %v652_v63  ;;  %v682_v47 = vpop.permute.xlu1 %681 }
 0x8ee   :  { %v684_v2 = vmul.f32 %v1918_v45, %v682_v47 }
 0x8ef   :  { %656 = vrot.lane.b32.xlu0 %v654_v1, %s2097_s27 }
 0x8f0   :  { %686 = vrot.lane.b32.xlu1 %v684_v2, %s2092_s8 }
 0x961   :  { %v657_v4 = vpop.permute.xlu0 %656 }
 0x962   :  { %v2449_v7 = vadd.f32 %v657_v4, %v649_v3  ;;  %v687_v8 = vpop.permute.xlu1 %686 }
 0x963   :  { %v2451_v9 = vadd.f32 %v687_v8, %v679_v6 }
 0x964   :  { %1919 = vtanh.f32 %v2449_v7 }
 0x965   :  { %1921 = vtanh.f32 %v2451_v9 }
 0x966   :  { %1923 = vpow2.f32 %v1525_v23 }
 0x96e   :  { %v1920_v10 = vpop.eup %1919 }
 0x96f   :  { %v1922_v5 = vpop.eup %1921  ;;  %662 = vrot.lane.b32.xlu0 %v1920_v10, %s2097_s27 }
 0x970   :  { %692 = vrot.lane.b32.xlu1 %v1922_v5, %s2092_s8  ;;  %v1924_v59 = vpop.eup %1923 }
 0x971   :  { %v673_v39 = vadd.f32 1.0, %v1924_v59 }
 0x973   :  { %1925 = vrcp.f32 %v673_v39 }
 0x97d   :  { %v1926_v40 = vpop.eup %1925 }
 0x9e1   :  { %v663_v61 = vpop.permute.xlu0 %662 }
 0x9e2   :  { %v665_v41 = vmul.f32 %v1916_v56, %v663_v61  ;;  %v693_v42 = vpop.permute.xlu1 %692 }
 0x9e3   :  { %v695_v46 = vmul.f32 %v1926_v40, %v693_v42 }
 0x9e4   :  { %697 = vrot.lane.b32.xlu0 %v665_v41, %s2092_s8 }
 0x9e5   :  { %701 = vrot.lane.b32.xlu1 %v695_v46, %s2097_s27 }
 0xa56   :  { %v698_v48 = vpop.permute.xlu0 %697 }
 0xa57   :  { %v702_v49 = vpop.permute.xlu1 %701 }
 0xa58   :  { %v704_v51 = vsel %vm116_vm1, %v698_v48, %v702_v49 }
 0xa59   :  { %v1527_v11 = vpack.c.bf16 %v704_v51, %v704_v51 }
 0xa5b   :  { %1528 = vmatmul.mubr.msk.bf16.vlgmr.msra.gmra.mrb[12].mxu0 %vm2267_vm3, %v1527_v11  ;;  %1722 = vmatmul.mubr.msk.bf16.vlgmr.msra.gmra.mrb[12].mxu1 %vm2267_vm3, %v1527_v11 }
 0xa5c   :  { %857 = vmatpush1.bf16.msra.mxu0 %v2180_v13  ;;  %1726 = vmatpush3.bf16.msra.mxu1 %v2182_v14 }
 0xa5d   :  { %858 = vmatprep.subr.bf16.mxu0 %v2185_v16  ;;  %1727 = vmatprep.subr.bf16.mxu1 %v2098_v15 }
 0xa5e   :  { %888 = vmatprep.mubr.bf16.mxu0 %v2099_v38  ;;  %1741 = vmatprep.mubr.msk.bf16.mxu1 %vm2100_vm0, %v2098_v15 }
 0xa60   :  { %859 = vmatpush1.bf16.msra.mxu0 %v2193_v18  ;;  %1728 = vmatpush3.bf16.msra.mxu1 %v2189_v17 }
 0xa61   :  { %860 = vmatprep.subr.bf16.mxu0 %v2196_v19  ;;  %1729 = vmatprep.subr.bf16.mxu1 %v2098_v15 }
 0xa64   :  { %861 = vmatpush1.bf16.msra.mxu0 %v2203_v21  ;;  %1730 = vmatpush3.bf16.msra.mxu1 %v2199_v20 }
 0xa65   :  { %862 = vmatprep.subr.bf16.mxu0 %v2206_v22  ;;  %1731 = vmatprep.subr.bf16.mxu1 %v2098_v15 }
 0xa68   :  { %863 = vmatpush1.bf16.msra.mxu0 %v2213_v25  ;;  %1732 = vmatpush3.bf16.msra.mxu1 %v2209_v24 }
 0xa69   :  { %864 = vmatprep.subr.bf16.mxu0 %v2217_v26  ;;  %1733 = vmatprep.subr.bf16.mxu1 %v2098_v15 }
 0xa6c   :  { %865 = vmatpush1.bf16.msra.mxu0 %v2224_v28  ;;  %1734 = vmatpush3.bf16.msra.mxu1 %v2220_v27 }
 0xa6d   :  { %866 = vmatprep.subr.bf16.mxu0 %v2227_v29  ;;  %1735 = vmatprep.subr.bf16.mxu1 %v2098_v15 }
 0xa70   :  { %867 = vmatpush1.bf16.msra.mxu0 %v2234_v31  ;;  %1736 = vmatpush3.bf16.msra.mxu1 %v2230_v30 }
 0xa71   :  { %868 = vmatprep.subr.bf16.mxu0 %v2237_v32  ;;  %1737 = vmatprep.subr.bf16.mxu1 %v2098_v15 }
 0xa74   :  { %869 = vmatpush1.bf16.msra.mxu0 %v2244_v34  ;;  %1738 = vmatpush3.bf16.msra.mxu1 %v2240_v33 }
 0xa75   :  { %870 = vmatprep.subr.bf16.mxu0 %v2250_v35  ;;  %1739 = vmatprep.subr.bf16.mxu1 %v2098_v15 }
 0xa78   :  { %871 = vmatpush1.bf16.msra.mxu0 %v2252_v36  ;;  %1740 = vmatpush3.bf16.msra.mxu1 %v2254_v37 }
 0xa79   :  { %1005 = vmatprep.subr.bf16.mxu0 %v2178_v12  ;;  %1745 = vmatprep.subr.bf16.mxu1 %v2098_v15 }
 0xb2e   :  { %v741_v52 = vpop.f32.mrb[12].mxu0  ;;  %v784_v53 = vpop.f32.mrb[12].mxu1 }
 0xb2f   :  { %v790_v54 = vadd.f32 %v1529_v44, %v784_v53  ;;  %v743_v55 = vpop.f32.mrb[13].mxu0  ;;  %v1723_v57 = vpop.f32.mrb[13].mxu1  ;;  %v742_v1 = vadd.f32 %v741_v52, %v2321_v0 }
 0xb30   :  { %v744_v58 = vadd.f32 %v743_v55, %v2316_v50  ;;  %v745_v60 = vpop.f32.mrb[14].mxu0  ;;  %v787_v62 = vpop.f32.mrb[14].mxu1 }
 0xb31   :  { %1927 = vtanh.f32 %v790_v54  ;;  %v746_v56 = vpop.f32.mrb[15].mxu0  ;;  %v1724_v63 = vpop.f32.mrb[15].mxu1  ;;  %v1533_v47 = vmul.f32 -1.442695, %v790_v54  ;;  %v1534_v2 = vmul.f32 -1.442695, %v742_v1 }
 0xb32   :  { %1929 = vtanh.f32 %v744_v58  ;;  %v1535_v44 = vmul.f32 -1.442695, %v744_v58 }
 0xb33   :  { %1931 = vpow2.f32 %v1533_v47 }
 0xb34   :  { %1933 = vpow2.f32 %v1534_v2 }
 0xb3b   :  { %v1928_v12 = vpop.eup %1927 }
 0xb3c   :  { %v1930_v45 = vpop.eup %1929  ;;  %800 = vrot.lane.b32.xlu0 %v1928_v12, %s2097_s27 }
 0xb3d   :  { %830 = vrot.lane.b32.xlu1 %v1930_v45, %s2092_s8  ;;  %v1932_v3 = vpop.eup %1931 }
 0xb3e   :  { %v1934_v4 = vpop.eup %1933  ;;  %v794_v6 = vadd.f32 1.0, %v1932_v3 }
 0xb3f   :  { %v821_v8 = vadd.f32 1.0, %v1934_v4 }
 0xb40   :  { %1935 = vrcp.f32 %v794_v6 }
 0xb41   :  { %1937 = vrcp.f32 %v821_v8 }
 0xb4a   :  { %v1936_v10 = vpop.eup %1935 }
 0xb4b   :  { %v1938_v23 = vpop.eup %1937  ;;  %v798_v40 = vmul.f32 %v1936_v10, %v2449_v7 }
 0xb4c   :  { %v828_v42 = vmul.f32 %v1938_v23, %v2451_v9 }
 0xbae   :  { %v801_v5 = vpop.permute.xlu0 %800 }
 0xbaf   :  { %v803_v59 = vmul.f32 %v1936_v10, %v801_v5  ;;  %v831_v39 = vpop.permute.xlu1 %830 }
 0xbb0   :  { %v833_v61 = vmul.f32 %v1938_v23, %v831_v39 }
 0xbb1   :  { %805 = vrot.lane.b32.xlu0 %v803_v59, %s2097_s27 }
 0xbb2   :  { %835 = vrot.lane.b32.xlu1 %v833_v61, %s2092_s8 }
 0xc23   :  { %v806_v41 = vpop.permute.xlu0 %805 }
 0xc24   :  { %v2510_v46 = vadd.f32 %v806_v41, %v798_v40  ;;  %v836_v48 = vpop.permute.xlu1 %835 }
 0xc25   :  { %v2512_v49 = vadd.f32 %v836_v48, %v828_v42 }
 0xc26   :  { %1939 = vtanh.f32 %v2510_v46 }
 0xc27   :  { %1941 = vtanh.f32 %v2512_v49 }
 0xc28   :  { %1943 = vpow2.f32 %v1535_v44  ;;  %v2588_v44 = vld [vmem:[#allocation5] ss:$8 sps:$4 sm:$0xff]  }
 0xc30   :  { %v1940_v51 = vpop.eup %1939 }
 0xc31   :  { %v1942_v11 = vpop.eup %1941  ;;  %811 = vrot.lane.b32.xlu0 %v1940_v51, %s2097_s27 }
 0xc32   :  { %841 = vrot.lane.b32.xlu1 %v1942_v11, %s2092_s8  ;;  %v1944_v7 = vpop.eup %1943 }
 0xc33   :  { %v822_v52 = vadd.f32 1.0, %v1944_v7  ;;  %v2021_v7 = vld [vmem:[#allocation3] sm:$0xff]  }
 0xc35   :  { %1945 = vrcp.f32 %v822_v52  ;;  %v2591_v52 = vld [vmem:[#allocation5 + $0x14] ss:$8 sps:$4 sm:$0xff]  }
 0xc3f   :  { %v1946_v53 = vpop.eup %1945 }
 0xca3   :  { %v812_v9 = vpop.permute.xlu0 %811 }
 0xca4   :  { %v814_v54 = vmul.f32 %v1936_v10, %v812_v9  ;;  %v842_v55 = vpop.permute.xlu1 %841  ;;  %v2598_v9 = vld [vmem:[#allocation5 + $0x10] ss:$8 sps:$4 sm:$0xff]  }
 0xca5   :  { %v844_v57 = vmul.f32 %v1946_v53, %v842_v55  ;;  %v2024_v53 = vld [vmem:[#allocation3 + $0x8] sm:$0xff]  }
 0xca6   :  { %846 = vrot.lane.b32.xlu0 %v814_v54, %s2092_s8  ;;  %v2601_v54 = vld [vmem:[#allocation5 + $0x24] ss:$8 sps:$4 sm:$0xff]   ;;  %v2605_v55 = vld [vmem:[#allocation5 + $0x20] ss:$8 sps:$4 sm:$0xff]  }
 0xca7   :  { %850 = vrot.lane.b32.xlu1 %v844_v57, %s2097_s27  ;;  %v2027_v57 = vld [vmem:[#allocation3 + $0x10] sm:$0xff]  }
 0xd18   :  { %v847_v60 = vpop.permute.xlu0 %846 }
 0xd19   :  { %v851_v62 = vpop.permute.xlu1 %850 }
 0xd1a   :  { %v853_v56 = vsel %vm116_vm1, %v847_v60, %v851_v62  ;;  %v2608_v60 = vld [vmem:[#allocation5 + $0x34] ss:$8 sps:$4 sm:$0xff]   ;;  %v2612_v62 = vld [vmem:[#allocation5 + $0x30] ss:$8 sps:$4 sm:$0xff]  }
 0xd1b   :  { %v1537_v63 = vpack.c.bf16 %v853_v56, %v853_v56  ;;  %v2030_v56 = vld [vmem:[#allocation3 + $0x18] sm:$0xff]  }
 0xd1d   :  { %1538 = vmatmul.mubr.msk.bf16.vlgmr.msra.gmra.mrb[16].mxu0 %vm2267_vm3, %v1537_v63  ;;  %1742 = vmatmul.mubr.msk.bf16.vlgmr.msra.gmra.mrb[16].mxu1 %vm2267_vm3, %v1537_v63  ;;  %v2615_v63 = vld [vmem:[#allocation5 + $0x44] ss:$8 sps:$4 sm:$0xff]  }
 0xd1e   :  { %1006 = vmatpush1.bf16.msra.mxu0 %v2180_v13  ;;  %1746 = vmatpush3.bf16.msra.mxu1 %v2182_v14  ;;  %v2558_v13 = vld [vmem:[#allocation5 + $0x4] ss:$8 sps:$4 sm:$0xff]  }
 0xd1f   :  { %1007 = vmatprep.subr.bf16.mxu0 %v2185_v16  ;;  %1747 = vmatprep.subr.bf16.mxu1 %v2098_v15  ;;  %v1539_v14 = vld [vmem:[%s2742_s0 + $0x28] sm:$0xff] }
 0xd20   :  { %1037 = vmatprep.mubr.bf16.mxu0 %v2099_v38  ;;  %1761 = vmatprep.mubr.msk.bf16.mxu1 %vm2100_vm0, %v2098_v15 }
 0xd22   :  { %1008 = vmatpush1.bf16.msra.mxu0 %v2193_v18  ;;  %1748 = vmatpush3.bf16.msra.mxu1 %v2189_v17 }
 0xd23   :  { %1009 = vmatprep.subr.bf16.mxu0 %v2196_v19  ;;  %1749 = vmatprep.subr.bf16.mxu1 %v2098_v15 }
 0xd26   :  { %1010 = vmatpush1.bf16.msra.mxu0 %v2203_v21  ;;  %1750 = vmatpush3.bf16.msra.mxu1 %v2199_v20 }
 0xd27   :  { %1011 = vmatprep.subr.bf16.mxu0 %v2206_v22  ;;  %1751 = vmatprep.subr.bf16.mxu1 %v2098_v15 }
 0xd2a   :  { %1012 = vmatpush1.bf16.msra.mxu0 %v2213_v25  ;;  %1752 = vmatpush3.bf16.msra.mxu1 %v2209_v24 }
 0xd2b   :  { %1013 = vmatprep.subr.bf16.mxu0 %v2217_v26  ;;  %1753 = vmatprep.subr.bf16.mxu1 %v2098_v15 }
 0xd2e   :  { %1014 = vmatpush1.bf16.msra.mxu0 %v2224_v28  ;;  %1754 = vmatpush3.bf16.msra.mxu1 %v2220_v27 }
 0xd2f   :  { %1015 = vmatprep.subr.bf16.mxu0 %v2227_v29  ;;  %1755 = vmatprep.subr.bf16.mxu1 %v2098_v15 }
 0xd32   :  { %1016 = vmatpush1.bf16.msra.mxu0 %v2234_v31  ;;  %1756 = vmatpush3.bf16.msra.mxu1 %v2230_v30 }
 0xd33   :  { %1017 = vmatprep.subr.bf16.mxu0 %v2237_v32  ;;  %1757 = vmatprep.subr.bf16.mxu1 %v2098_v15 }
 0xd36   :  { %1018 = vmatpush1.bf16.msra.mxu0 %v2244_v34  ;;  %1758 = vmatpush3.bf16.msra.mxu1 %v2240_v33 }
 0xd37   :  { %1019 = vmatprep.subr.bf16.mxu0 %v2250_v35  ;;  %1759 = vmatprep.subr.bf16.mxu1 %v2098_v15 }
 0xd3a   :  { %1020 = vmatpush1.bf16.msra.mxu0 %v2252_v36  ;;  %1760 = vmatpush3.bf16.msra.mxu1 %v2254_v37 }
 0xd3b   :  { %1154 = vmatprep.subr.bf16.mxu0 %v2558_v13  ;;  %1765 = vmatprep.subr.bf16.mxu1 %v2098_v15 }
 0xdf0   :  { %v890_v16 = vpop.f32.mrb[16].mxu0  ;;  %v933_v17 = vpop.f32.mrb[16].mxu1 }
 0xdf1   :  { %v939_v18 = vadd.f32 %v1539_v14, %v933_v17  ;;  %v892_v19 = vpop.f32.mrb[17].mxu0  ;;  %v1743_v20 = vpop.f32.mrb[17].mxu1  ;;  %v891_v29 = vadd.f32 %v890_v16, %v2321_v0  ;;  %v2619_v14 = vld [vmem:[#allocation5 + $0x40] ss:$8 sps:$4 sm:$0xff]   ;;  %v2622_v17 = vld [vmem:[#allocation5 + $0x54] ss:$8 sps:$4 sm:$0xff]  }
 0xdf2   :  { %v893_v21 = vadd.f32 %v892_v19, %v2316_v50  ;;  %v894_v22 = vpop.f32.mrb[18].mxu0  ;;  %v936_v24 = vpop.f32.mrb[18].mxu1  ;;  %v2033_v16 = vld [vmem:[#allocation3 + $0x20] sm:$0xff]   ;;  %v2036_v19 = vld [vmem:[#allocation3 + $0x28] sm:$0xff]  }
 0xdf3   :  { %1947 = vtanh.f32 %v939_v18  ;;  %v895_v25 = vpop.f32.mrb[19].mxu0  ;;  %v1744_v26 = vpop.f32.mrb[19].mxu1  ;;  %v1543_v30 = vmul.f32 -1.442695, %v939_v18  ;;  %v1544_v31 = vmul.f32 -1.442695, %v891_v29 }
 0xdf4   :  { %1949 = vtanh.f32 %v893_v21  ;;  %v1545_v23 = vmul.f32 -1.442695, %v893_v21  ;;  %v2626_v18 = vld [vmem:[#allocation5 + $0x50] ss:$8 sps:$4 sm:$0xff]   ;;  %v2629_v20 = vld [vmem:[#allocation5 + $0x64] ss:$8 sps:$4 sm:$0xff]  }
 0xdf5   :  { %1951 = vpow2.f32 %v1543_v30  ;;  %v2633_v21 = vld [vmem:[#allocation5 + $0x60] ss:$8 sps:$4 sm:$0xff]   ;;  %v2039_v22 = vld [vmem:[#allocation3 + $0x30] sm:$0xff]   ;;  %v2042_v26 = vld [vmem:[#allocation3 + $0x38] sm:$0xff]  }
 0xdf6   :  { %1953 = vpow2.f32 %v1544_v31  ;;  %v2636_v24 = vld [vmem:[#allocation5 + $0x74] ss:$8 sps:$4 sm:$0xff]   ;;  %v2640_v25 = vld [vmem:[#allocation5 + $0x70] ss:$8 sps:$4 sm:$0xff]  }
 0xdfd   :  { %v1948_v27 = vpop.eup %1947 }
 0xdfe   :  { %v1950_v28 = vpop.eup %1949  ;;  %949 = vrot.lane.b32.xlu0 %v1948_v27, %s2097_s27  ;;  %v1549_v27 = vld [vmem:[%s2742_s0 + $0x30] sm:$0xff] }
 0xdff   :  { %979 = vrot.lane.b32.xlu1 %v1950_v28, %s2092_s8  ;;  %v1952_v32 = vpop.eup %1951 }
 0xe00   :  { %v1954_v33 = vpop.eup %1953  ;;  %v943_v34 = vadd.f32 1.0, %v1952_v32 }
 0xe01   :  { %v970_v35 = vadd.f32 1.0, %v1954_v33 }
 0xe02   :  { %1955 = vrcp.f32 %v943_v34 }
 0xe03   :  { %1957 = vrcp.f32 %v970_v35 }
 0xe0c   :  { %v1956_v36 = vpop.eup %1955 }
 0xe0d   :  { %v1958_v58 = vpop.eup %1957  ;;  %v947_v47 = vmul.f32 %v1956_v36, %v2510_v46 }
 0xe0e   :  { %v977_v3 = vmul.f32 %v1958_v58, %v2512_v49 }
 0xe70   :  { %v950_v37 = vpop.permute.xlu0 %949 }
 0xe71   :  { %v952_v12 = vmul.f32 %v1956_v36, %v950_v37  ;;  %v980_v45 = vpop.permute.xlu1 %979 }
 0xe72   :  { %v982_v1 = vmul.f32 %v1958_v58, %v980_v45 }
 0xe73   :  { %954 = vrot.lane.b32.xlu0 %v952_v12, %s2097_s27 }
 0xe74   :  { %984 = vrot.lane.b32.xlu1 %v982_v1, %s2092_s8 }
 0xee5   :  { %v955_v2 = vpop.permute.xlu0 %954 }
 0xee6   :  { %v2573_v4 = vadd.f32 %v955_v2, %v947_v47  ;;  %v985_v6 = vpop.permute.xlu1 %984 }
 0xee7   :  { %v2575_v8 = vadd.f32 %v985_v6, %v977_v3 }
 0xee8   :  { %1959 = vtanh.f32 %v2573_v4 }
 0xee9   :  { %1961 = vtanh.f32 %v2575_v8 }
 0xeea   :  { %1963 = vpow2.f32 %v1545_v23 }
 0xef2   :  { %v1960_v10 = vpop.eup %1959 }
 0xef3   :  { %v1962_v5 = vpop.eup %1961  ;;  %960 = vrot.lane.b32.xlu0 %v1960_v10, %s2097_s27 }
 0xef4   :  { %990 = vrot.lane.b32.xlu1 %v1962_v5, %s2092_s8  ;;  %v1964_v59 = vpop.eup %1963 }
 0xef5   :  { %v971_v39 = vadd.f32 1.0, %v1964_v59 }
 0xef7   :  { %1965 = vrcp.f32 %v971_v39 }
 0xf01   :  { %v1966_v40 = vpop.eup %1965 }
 0xf65   :  { %v961_v61 = vpop.permute.xlu0 %960 }
 0xf66   :  { %v963_v41 = vmul.f32 %v1956_v36, %v961_v61  ;;  %v991_v42 = vpop.permute.xlu1 %990 }
 0xf67   :  { %v993_v46 = vmul.f32 %v1966_v40, %v991_v42 }
 0xf68   :  { %995 = vrot.lane.b32.xlu0 %v963_v41, %s2092_s8 }
 0xf69   :  { %999 = vrot.lane.b32.xlu1 %v993_v46, %s2097_s27 }
 0xfda   :  { %v996_v48 = vpop.permute.xlu0 %995 }
 0xfdb   :  { %v1000_v49 = vpop.permute.xlu1 %999 }
 0xfdc   :  { %v1002_v51 = vsel %vm116_vm1, %v996_v48, %v1000_v49 }
 0xfdd   :  { %v1547_v11 = vpack.c.bf16 %v1002_v51, %v1002_v51 }
 0xfdf   :  { %1548 = vmatmul.mubr.msk.bf16.vlgmr.msra.gmra.mrb[20].mxu0 %vm2267_vm3, %v1547_v11  ;;  %1762 = vmatmul.mubr.msk.bf16.vlgmr.msra.gmra.mrb[20].mxu1 %vm2267_vm3, %v1547_v11 }
 0xfe0   :  { %1155 = vmatpush1.bf16.msra.mxu0 %v2588_v44  ;;  %1766 = vmatpush3.bf16.msra.mxu1 %v2021_v7 }
 0xfe1   :  { %1156 = vmatprep.subr.bf16.mxu0 %v2591_v52  ;;  %1767 = vmatprep.subr.bf16.mxu1 %v2098_v15 }
 0xfe2   :  { %1186 = vmatprep.mubr.bf16.mxu0 %v2099_v38  ;;  %1781 = vmatprep.mubr.msk.bf16.mxu1 %vm2100_vm0, %v2098_v15 }
 0xfe4   :  { %1157 = vmatpush1.bf16.msra.mxu0 %v2598_v9  ;;  %1768 = vmatpush3.bf16.msra.mxu1 %v2024_v53 }
 0xfe5   :  { %1158 = vmatprep.subr.bf16.mxu0 %v2601_v54  ;;  %1769 = vmatprep.subr.bf16.mxu1 %v2098_v15 }
 0xfe8   :  { %1159 = vmatpush1.bf16.msra.mxu0 %v2605_v55  ;;  %1770 = vmatpush3.bf16.msra.mxu1 %v2027_v57 }
 0xfe9   :  { %1160 = vmatprep.subr.bf16.mxu0 %v2608_v60  ;;  %1771 = vmatprep.subr.bf16.mxu1 %v2098_v15 }
 0xfec   :  { %1161 = vmatpush1.bf16.msra.mxu0 %v2612_v62  ;;  %1772 = vmatpush3.bf16.msra.mxu1 %v2030_v56 }
 0xfed   :  { %1162 = vmatprep.subr.bf16.mxu0 %v2615_v63  ;;  %1773 = vmatprep.subr.bf16.mxu1 %v2098_v15 }
 0xff0   :  { %1163 = vmatpush1.bf16.msra.mxu0 %v2619_v14  ;;  %1774 = vmatpush3.bf16.msra.mxu1 %v2033_v16 }
 0xff1   :  { %1164 = vmatprep.subr.bf16.mxu0 %v2622_v17  ;;  %1775 = vmatprep.subr.bf16.mxu1 %v2098_v15 }
 0xff4   :  { %1165 = vmatpush1.bf16.msra.mxu0 %v2626_v18  ;;  %1776 = vmatpush3.bf16.msra.mxu1 %v2036_v19 }
 0xff5   :  { %1166 = vmatprep.subr.bf16.mxu0 %v2629_v20  ;;  %1777 = vmatprep.subr.bf16.mxu1 %v2098_v15 }
 0xff8   :  { %1167 = vmatpush1.bf16.msra.mxu0 %v2633_v21  ;;  %1778 = vmatpush3.bf16.msra.mxu1 %v2039_v22 }
 0xff9   :  { %1168 = vmatprep.subr.bf16.mxu0 %v2636_v24  ;;  %1779 = vmatprep.subr.bf16.mxu1 %v2098_v15 }
 0xffc   :  { %1169 = vmatpush1.bf16.msra.mxu0 %v2640_v25  ;;  %1780 = vmatpush3.bf16.msra.mxu1 %v2042_v26 }
 0xffd   :  { %1303 = vmatprep.subr.bf16.mxu0 %v2558_v13 }
0x10b2   :  { %v1039_v28 = vpop.f32.mrb[20].mxu0  ;;  %v1082_v29 = vpop.f32.mrb[20].mxu1 }
0x10b3   :  { %v1088_v30 = vadd.f32 %v1549_v27, %v1082_v29  ;;  %v1041_v31 = vpop.f32.mrb[21].mxu0  ;;  %v1763_v32 = vpop.f32.mrb[21].mxu1  ;;  %v1040_v13 = vadd.f32 %v1039_v28, %v2321_v0 }
0x10b4   :  { %v1042_v33 = vadd.f32 %v1041_v31, %v2316_v50  ;;  %v1043_v34 = vpop.f32.mrb[22].mxu0  ;;  %v1085_v35 = vpop.f32.mrb[22].mxu1 }
0x10b5   :  { %1967 = vtanh.f32 %v1088_v30  ;;  %v1044_v36 = vpop.f32.mrb[23].mxu0  ;;  %v1764_v37 = vpop.f32.mrb[23].mxu1  ;;  %v1553_v45 = vmul.f32 -1.442695, %v1088_v30  ;;  %v1554_v1 = vmul.f32 -1.442695, %v1040_v13 }
0x10b6   :  { %1969 = vtanh.f32 %v1042_v33  ;;  %v1555_v7 = vmul.f32 -1.442695, %v1042_v33 }
0x10b7   :  { %1971 = vpow2.f32 %v1553_v45 }
0x10b8   :  { %1973 = vpow2.f32 %v1554_v1 }
0x10bf   :  { %v1968_v58 = vpop.eup %1967 }
0x10c0   :  { %v1970_v12 = vpop.eup %1969  ;;  %1098 = vrot.lane.b32.xlu0 %v1968_v58, %s2097_s27 }
0x10c1   :  { %1128 = vrot.lane.b32.xlu1 %v1970_v12, %s2092_s8  ;;  %v1972_v47 = vpop.eup %1971 }
0x10c2   :  { %v1974_v2 = vpop.eup %1973  ;;  %v1092_v3 = vadd.f32 1.0, %v1972_v47 }
0x10c3   :  { %v1119_v6 = vadd.f32 1.0, %v1974_v2 }
0x10c4   :  { %1975 = vrcp.f32 %v1092_v3 }
0x10c5   :  { %1977 = vrcp.f32 %v1119_v6 }
0x10ce   :  { %v1976_v10 = vpop.eup %1975 }
0x10cf   :  { %v1978_v23 = vpop.eup %1977  ;;  %v1096_v40 = vmul.f32 %v1976_v10, %v2573_v4 }
0x10d0   :  { %v1126_v42 = vmul.f32 %v1978_v23, %v2575_v8 }
0x1132   :  { %v1099_v5 = vpop.permute.xlu0 %1098 }
0x1133   :  { %v1101_v59 = vmul.f32 %v1976_v10, %v1099_v5  ;;  %v1129_v39 = vpop.permute.xlu1 %1128 }
0x1134   :  { %v1131_v61 = vmul.f32 %v1978_v23, %v1129_v39 }
0x1135   :  { %1103 = vrot.lane.b32.xlu0 %v1101_v59, %s2097_s27 }
0x1136   :  { %1133 = vrot.lane.b32.xlu1 %v1131_v61, %s2092_s8 }
0x11a7   :  { %v1104_v41 = vpop.permute.xlu0 %1103 }
0x11a8   :  { %v2655_v46 = vadd.f32 %v1104_v41, %v1096_v40  ;;  %v1134_v48 = vpop.permute.xlu1 %1133 }
0x11a9   :  { %v2657_v49 = vadd.f32 %v1134_v48, %v1126_v42 }
0x11aa   :  { %1979 = vtanh.f32 %v2655_v46 }
0x11ab   :  { %1981 = vtanh.f32 %v2657_v49 }
0x11ac   :  { %1983 = vpow2.f32 %v1555_v7 }
0x11b4   :  { %v1980_v51 = vpop.eup %1979 }
0x11b5   :  { %v1982_v11 = vpop.eup %1981  ;;  %1109 = vrot.lane.b32.xlu0 %v1980_v51, %s2097_s27 }
0x11b6   :  { %1139 = vrot.lane.b32.xlu1 %v1982_v11, %s2092_s8  ;;  %v1984_v4 = vpop.eup %1983 }
0x11b7   :  { %v1120_v53 = vadd.f32 1.0, %v1984_v4 }
0x11b9   :  { %1985 = vrcp.f32 %v1120_v53 }
0x11c3   :  { %v1986_v57 = vpop.eup %1985 }
0x1227   :  { %v1110_v8 = vpop.permute.xlu0 %1109 }
0x1228   :  { %v1112_v56 = vmul.f32 %v1976_v10, %v1110_v8  ;;  %v1140_v16 = vpop.permute.xlu1 %1139 }
0x1229   :  { %v1142_v19 = vmul.f32 %v1986_v57, %v1140_v16 }
0x122a   :  { %1144 = vrot.lane.b32.xlu0 %v1112_v56, %s2092_s8 }
0x122b   :  { %1148 = vrot.lane.b32.xlu1 %v1142_v19, %s2097_s27 }
0x129c   :  { %v1145_v22 = vpop.permute.xlu0 %1144 }
0x129d   :  { %v1149_v26 = vpop.permute.xlu1 %1148 }
0x129e   :  { %v1151_v27 = vsel %vm116_vm1, %v1145_v22, %v1149_v26  ;;  %v1375_v26 = vld [vmem:[%s2746_s4 + $0x8] sm:$0xff] }
0x129f   :  { %v1557_v28 = vpack.c.bf16 %v1151_v27, %v1151_v27  ;;  %v2101_v27 = vmov 0.0|0.0  }
0x12a0   :  { %1804 = vmatprep.subr.bf16.mxu1 %v2101_v27 }
0x12a1   :  { %1558 = vmatmul.mubr.msk.bf16.vlgmr.msra.gmra.mrb[24].mxu0 %vm2267_vm3, %v1557_v28  ;;  %1782 = vmatmul.mubr.msk.bf16.vlgmr.msra.gmra.mrb[24].mxu1 %vm2267_vm3, %v1557_v28 }
0x12a2   :  { %1304 = vmatpush1.bf16.msra.mxu0 %v2588_v44  ;;  %1335 = vmatprep.mubr.bf16.mxu0 %v2099_v38 }
0x12a3   :  { %1305 = vmatprep.subr.bf16.mxu0 %v2591_v52  ;;  %1801 = vmatprep.mubr.msk.f32.mxu1 %vm2100_vm0, %v2098_v15  ;;  %v1559_v15 = vld [vmem:[%s2742_s0 + $0x38] sm:$0xff] }
0x12a6   :  { %1306 = vmatpush1.bf16.msra.mxu0 %v2598_v9 }
0x12a7   :  { %1307 = vmatprep.subr.bf16.mxu0 %v2601_v54 }
0x12aa   :  { %1308 = vmatpush1.bf16.msra.mxu0 %v2605_v55 }
0x12ab   :  { %1309 = vmatprep.subr.bf16.mxu0 %v2608_v60 }
0x12ae   :  { %1310 = vmatpush1.bf16.msra.mxu0 %v2612_v62 }
0x12af   :  { %1311 = vmatprep.subr.bf16.mxu0 %v2615_v63 }
0x12b2   :  { %1312 = vmatpush1.bf16.msra.mxu0 %v2619_v14 }
0x12b3   :  { %1313 = vmatprep.subr.bf16.mxu0 %v2622_v17 }
0x12b6   :  { %1314 = vmatpush1.bf16.msra.mxu0 %v2626_v18 }
0x12b7   :  { %1315 = vmatprep.subr.bf16.mxu0 %v2629_v20 }
0x12ba   :  { %1316 = vmatpush1.bf16.msra.mxu0 %v2633_v21 }
0x12bb   :  { %1317 = vmatprep.subr.bf16.mxu0 %v2636_v24 }
0x12be   :  { %1318 = vmatpush1.bf16.msra.mxu0 %v2640_v25 }
0x1374   :  { %v1188_v38 = vpop.f32.mrb[24].mxu0  ;;  %v1231_v44 = vpop.f32.mrb[24].mxu1 }
0x1375   :  { %v1237_v52 = vadd.f32 %v1559_v15, %v1231_v44  ;;  %v1190_v9 = vpop.f32.mrb[25].mxu0  ;;  %v1783_v54 = vpop.f32.mrb[25].mxu1  ;;  %v1189_v20 = vadd.f32 %v1188_v38, %v2321_v0  ;;  %v1377_v15 = vld [vmem:[%s2746_s4 + $0x18] sm:$0xff]  ;;  %v1378_v44 = vld [vmem:[%s2746_s4 + $0x20] sm:$0xff] }
0x1376   :  { %v1191_v55 = vadd.f32 %v1190_v9, %v2316_v50  ;;  %v1192_v60 = vpop.f32.mrb[26].mxu0  ;;  %v1234_v62 = vpop.f32.mrb[26].mxu1  ;;  %v1380_v54 = vld [vmem:[%s2746_s4 + $0x30] sm:$0xff] }
0x1377   :  { %1987 = vtanh.f32 %v1237_v52  ;;  %v1193_v63 = vpop.f32.mrb[27].mxu0  ;;  %v1784_v14 = vpop.f32.mrb[27].mxu1  ;;  %v1563_v21 = vmul.f32 -1.442695, %v1237_v52  ;;  %v1564_v24 = vmul.f32 -1.442695, %v1189_v20 }
0x1378   :  { %1989 = vtanh.f32 %v1191_v55  ;;  %v1565_v6 = vmul.f32 -1.442695, %v1191_v55  ;;  %v1379_v52 = vld [vmem:[%s2746_s4 + $0x28] sm:$0xff]  ;;  %v1381_v55 = vld [vmem:[%s2746_s4 + $0x38] sm:$0xff] }
0x1379   :  { %1991 = vpow2.f32 %v1563_v21  ;;  %v1811_v9 = vpack.c.bf16 %v1379_v52, %v1378_v44  ;;  %v1814_v60 = vpack.c.bf16 %v1381_v55, %v1380_v54 }
0x137a   :  { %1993 = vpow2.f32 %v1564_v24 }
0x1381   :  { %v1988_v17 = vpop.eup %1987 }
0x1382   :  { %v1990_v18 = vpop.eup %1989  ;;  %1247 = vrot.lane.b32.xlu0 %v1988_v17, %s2097_s27 }
0x1383   :  { %1277 = vrot.lane.b32.xlu1 %v1990_v18, %s2092_s8  ;;  %v1992_v25 = vpop.eup %1991 }
0x1384   :  { %v1994_v29 = vpop.eup %1993  ;;  %v1241_v30 = vadd.f32 1.0, %v1992_v25 }
0x1385   :  { %v1268_v31 = vadd.f32 1.0, %v1994_v29 }
0x1386   :  { %1995 = vrcp.f32 %v1241_v30  ;;  %v1571_v30 = vld [vmem:[#allocation2] ss:$0 sm:$0xff] }
0x1387   :  { %1997 = vrcp.f32 %v1268_v31 }
0x1390   :  { %v1996_v32 = vpop.eup %1995 }
0x1391   :  { %v1998_v34 = vpop.eup %1997  ;;  %v1245_v58 = vmul.f32 %v1996_v32, %v2655_v46 }
0x1392   :  { %v1275_v13 = vmul.f32 %v1998_v34, %v2657_v49 }
0x13f4   :  { %v1248_v33 = vpop.permute.xlu0 %1247 }
0x13f5   :  { %v1250_v35 = vmul.f32 %v1996_v32, %v1248_v33  ;;  %v1278_v36 = vpop.permute.xlu1 %1277 }
0x13f6   :  { %v1280_v37 = vmul.f32 %v1998_v34, %v1278_v36 }
0x13f7   :  { %1252 = vrot.lane.b32.xlu0 %v1250_v35, %s2097_s27 }
0x13f8   :  { %1282 = vrot.lane.b32.xlu1 %v1280_v37, %s2092_s8 }
0x1469   :  { %v1253_v12 = vpop.permute.xlu0 %1252 }
0x146a   :  { %v1255_v45 = vadd.f32 %v1253_v12, %v1245_v58  ;;  %v1283_v1 = vpop.permute.xlu1 %1282 }
0x146b   :  { %v2699_v47 = vadd.f32 %v1283_v1, %v1275_v13 }
0x146c   :  { %1999 = vtanh.f32 %v1255_v45 }
0x146d   :  { %2001 = vtanh.f32 %v2699_v47 }
0x146e   :  { %2003 = vpow2.f32 %v1565_v6 }
0x1476   :  { %v2000_v2 = vpop.eup %1999 }
0x1477   :  { %v2002_v3 = vpop.eup %2001  ;;  %1258 = vrot.lane.b32.xlu0 %v2000_v2, %s2097_s27 }
0x1478   :  { %1288 = vrot.lane.b32.xlu1 %v2002_v3, %s2092_s8  ;;  %v2004_v10 = vpop.eup %2003 }
0x1479   :  { %v1269_v5 = vadd.f32 1.0, %v2004_v10 }
0x147b   :  { %2005 = vrcp.f32 %v1269_v5 }
0x1485   :  { %v2006_v59 = vpop.eup %2005 }
0x14e9   :  { %v1259_v23 = vpop.permute.xlu0 %1258 }
0x14ea   :  { %v1261_v39 = vmul.f32 %v1996_v32, %v1259_v23  ;;  %v1289_v61 = vpop.permute.xlu1 %1288 }
0x14eb   :  { %v1291_v40 = vmul.f32 %v2006_v59, %v1289_v61 }
0x14ec   :  { %1293 = vrot.lane.b32.xlu0 %v1261_v39, %s2092_s8 }
0x14ed   :  { %1297 = vrot.lane.b32.xlu1 %v1291_v40, %s2097_s27 }
0x155e   :  { %v1294_v41 = vpop.permute.xlu0 %1293 }
0x155f   :  { %v1298_v42 = vpop.permute.xlu1 %1297 }
0x1560   :  { %v1300_v46 = vsel %vm116_vm1, %v1294_v41, %v1298_v42 }
0x1561   :  { %v1567_v48 = vpack.c.bf16 %v1300_v46, %v1300_v46 }
0x1563   :  { %1568 = vmatmul.mubr.msk.bf16.vlgmr.msra.gmra.mrb[28].mxu0 %vm2267_vm3, %v1567_v48 }
0x1636   :  { %v1337_v49 = vpop.f32.mrb[28].mxu0 }
0x1637   :  { %v1339_v51 = vpop.f32.mrb[29].mxu0  ;;  %v1338_v8 = vadd.f32 %v1337_v49, %v2321_v0  ;;  %v1376_v0 = vld [vmem:[%s2746_s4 + $0x10] sm:$0xff] }
0x1638   :  { %v1340_v11 = vadd.f32 %v1339_v51, %v2316_v50  ;;  %v1341_v7 = vpop.f32.mrb[30].mxu0  ;;  %v1374_v50 = vld [vmem:[%s2746_s4] sm:$0xff]  ;;  %v1808_v38 = vpack.c.bf16 %v1377_v15, %v1376_v0 }
0x1639   :  { %v1342_v4 = vpop.f32.mrb[31].mxu0  ;;  %v1569_v57 = vmul.f32 -1.442695, %v1338_v8  ;;  %v1805_v28 = vpack.c.bf16 %v1375_v26, %v1374_v50 }
0x163a   :  { %2007 = vtanh.f32 %v1340_v11  ;;  %v1570_v18 = vmul.f32 -1.442695, %v1340_v11 }
0x163b   :  { %2009 = vpow2.f32 %v1569_v57  ;;  %1806 = vmatpush3.bf16.msra.mxu1 %v1805_v28 }
0x163c   :  { %1807 = vmatprep.subr.bf16.mxu1 %v2101_v27 }
0x163f   :  { %1809 = vmatpush3.bf16.msra.mxu1 %v1808_v38 }
0x1640   :  { %1810 = vmatprep.subr.bf16.mxu1 %v2101_v27 }
0x1643   :  { %1812 = vmatpush3.bf16.msra.mxu1 %v1811_v9 }
0x1644   :  { %v2008_v53 = vpop.eup %2007  ;;  %1813 = vmatprep.subr.bf16.mxu1 %v2101_v27 }
0x1645   :  { %1359 = vrot.lane.b32.xlu0 %v2008_v53, %s2092_s8  ;;  %v2010_v56 = vpop.eup %2009 }
0x1646   :  { %v1350_v16 = vadd.f32 1.0, %v2010_v56 }
0x1647   :  { %1815 = vmatpush3.bf16.msra.mxu1 %v1814_v60 }
0x1648   :  { %2011 = vrcp.f32 %v1350_v16 }
0x1652   :  { %v2012_v19 = vpop.eup %2011 }
0x1653   :  { %v1357_v62 = vmul.f32 %v2012_v19, %v2699_v47 }
0x16b7   :  { %v1360_v43 = vpop.permute.xlu0 %1359 }
0x16b8   :  { %v1362_v22 = vmul.f32 %v2012_v19, %v1360_v43 }
0x16ba   :  { %1364 = vrot.lane.b32.xlu1 %v1362_v22, %s2092_s8 }
0x172c   :  { %v1365_v63 = vpop.permute.xlu1 %1364 }
0x172d   :  { %v1367_v14 = vadd.f32 %v1365_v63, %v1357_v62 }
0x172f   :  { %2013 = vtanh.f32 %v1367_v14 }
0x1730   :  { %2015 = vpow2.f32 %v1570_v18 }
0x1739   :  { %v2014_v17 = vpop.eup %2013 }
0x173a   :  { %1370 = vrot.lane.b32.xlu0 %v2014_v17, %s2092_s8  ;;  %v2016_v20 = vpop.eup %2015 }
0x173b   :  { %v1351_v21 = vadd.f32 1.0, %v2016_v20 }
0x173d   :  { %2017 = vrcp.f32 %v1351_v21 }
0x1747   :  { %v2018_v24 = vpop.eup %2017 }
0x17ac   :  { %v1371_v25 = vpop.permute.xlu0 %1370 }
0x17ad   :  { %v1373_v29 = vmul.f32 %v2018_v24, %v1371_v25 }
0x17af   :  { %1802 = vmatmul.mubr.msk.f32.vlgmr.msra.gmra.mrb[28].mxu1 %vm1389_vm4, %v1373_v29 }
0x1882   :  { %v1459_v31 = vpop.f32.mrb[28].mxu1 }
0x1883   :  { %v1460_v32 = vadd.f32 %v1571_v30, %v1459_v31  ;;  %v1803_v33 = vpop.f32.mrb[29].mxu1 }
0x1885   :  { %1464 = vst.msk [vmem:[%s2748_s6] sm:$0xff] %vm1463_vm5, %v1460_v32 }
0x1886   :  { %1469 = vsyncpa [#allocation4], 1 }
0x1887   :  { %1470 = vsyncpa [#allocation6], 1 }

</bundles_post_ra>
